<compile_context>
chip_gen: v6e
topology: v6e:2x2x1
jax: 0.10.0
libtpu: 0.0.40
codegen_flags: <defaults>
</compile_context>

<pallas_src>
import jax
import jax.numpy as jnp
import numpy as np
from jax.experimental import pallas as pl
from jax.experimental.pallas import tpu as pltpu

K_RAW = 28 * 28          # 784 (full last dim of x -> no K padding needed)
N_OUT = 10
OUT_PAD = 128            # lane-dense padded logits width (real width = 10)


def _round_up(x, m):
    return ((x + m - 1) // m) * m


def _pick_tb(B):
    """Batch tile size. Large tiles amortize per-step overhead; keep >=2 grid steps at
    large B so the 'parallel' batch axis can use both v7x TensorCores."""
    if B < 8:
        return B                        # block == full array dim (allowed)
    if B < 256:
        return (B // 8) * 8             # largest multiple of 8 not exceeding B
    return min(1024, _round_up(pl.cdiv(B, 2), 128))


def mlp_kernel(x_ref, w1_ref, b1_ref, w2_ref, b2_ref, w3_ref, b3_ref,
               w4_ref, b4_ref, o_ref):
    # Layer 1: Linear(784 -> 512) + ReLU.  x arrives f32; cast to bf16 on the VPU
    # (hidden under the MXU) instead of a separate wrapper-side pad+cast pass.
    x = x_ref[...].astype(jnp.bfloat16)
    h = jnp.dot(x, w1_ref[...], preferred_element_type=jnp.float32)
    h = jnp.maximum(h + b1_ref[...], 0.0)
    # (Dropout(0.2) == identity in eval mode.)
    # Layer 2: Linear(512 -> 256) + ReLU
    h = jnp.dot(h.astype(jnp.bfloat16), w2_ref[...], preferred_element_type=jnp.float32)
    h = jnp.maximum(h + b2_ref[...], 0.0)
    # Layer 3: Linear(256 -> 128) + ReLU
    h = jnp.dot(h.astype(jnp.bfloat16), w3_ref[...], preferred_element_type=jnp.float32)
    h = jnp.maximum(h + b3_ref[...], 0.0)
    # Layer 4: Linear(128 -> 10), padded to 128 lanes (cols 10..127 carry zero weights/bias)
    out = jnp.dot(h.astype(jnp.bfloat16), w4_ref[...], preferred_element_type=jnp.float32)
    o_ref[...] = (out + b4_ref[...]).astype(o_ref.dtype)


def mlp_forward(x, params):
    """x: (B, 1, 28, 28) or (B, 784). Returns logits (B, 10) in float32."""
    B = x.shape[0]
    x2d = x.reshape(B, -1)
    if x2d.dtype != jnp.float32:
        x2d = x2d.astype(jnp.float32)
    (w1, b1), (w2, b2), (w3, b3), (w4, b4) = params

    TB = _pick_tb(B)
    grid = pl.cdiv(B, TB)

    # Weight prep: bf16 weights (tiny vs x at large B); only w4/b4 are padded to 128 lanes.
    w1b = w1.astype(jnp.bfloat16)
    w2b = w2.astype(jnp.bfloat16)
    w3b = w3.astype(jnp.bfloat16)
    w4b = jnp.pad(w4, ((0, 0), (0, OUT_PAD - N_OUT))).astype(jnp.bfloat16)
    b1f = b1.astype(jnp.float32)
    b2f = b2.astype(jnp.float32)
    b3f = b3.astype(jnp.float32)
    b4f = jnp.pad(b4, ((0, 0), (0, OUT_PAD - N_OUT))).astype(jnp.float32)

    const = lambda i: (0, 0)   # weights/biases: same block every grid step -> stay VMEM-resident

    weight_elems = K_RAW * 512 + 512 * 256 + 256 * 128 + 128 * OUT_PAD
    flops = 2 * B * weight_elems
    bytes_accessed = (B * K_RAW * 4            # x read (f32)
                      + B * OUT_PAD * 2        # logits write (bf16)
                      + weight_elems * 2       # bf16 weights
                      + (512 + 256 + 128 + OUT_PAD) * 4)  # f32 biases

    out_padded = pl.pallas_call(
        mlp_kernel,
        out_shape=jax.ShapeDtypeStruct((B, OUT_PAD), jnp.bfloat16),
        grid_spec=pltpu.PrefetchScalarGridSpec(
            num_scalar_prefetch=0,
            grid=(grid,),
            in_specs=[
                pl.BlockSpec((TB, K_RAW), lambda i: (i, 0)),   # x tile follows the grid
                pl.BlockSpec((K_RAW, 512), const),
                pl.BlockSpec((1, 512), const),
                pl.BlockSpec((512, 256), const),
                pl.BlockSpec((1, 256), const),
                pl.BlockSpec((256, 128), const),
                pl.BlockSpec((1, 128), const),
                pl.BlockSpec((128, OUT_PAD), const),
                pl.BlockSpec((1, OUT_PAD), const),
            ],
            out_specs=pl.BlockSpec((TB, OUT_PAD), lambda i: (i, 0)),
        ),
        compiler_params=pltpu.CompilerParams(
            dimension_semantics=("parallel",),
            vmem_limit_bytes=48 * 1024 * 1024,   # headroom for TB=1024 f32 x tiles on v5e
        ),
        cost_estimate=pl.CostEstimate(flops=flops, transcendentals=0,
                                      bytes_accessed=bytes_accessed),
    )(x2d, w1b, b1f, w2b, b2f, w3b, b3f, w4b, b4f)

    return out_padded[:B, :N_OUT].astype(jnp.float32)


def mlp_reference(x, params):
    """Pure-JAX fp32 reference for tolerance checking."""
    B = x.shape[0]
    h = x.reshape(B, -1).astype(jnp.float32)
    (w1, b1), (w2, b2), (w3, b3), (w4, b4) = params
    h = jnp.maximum(h @ w1 + b1, 0.0)
    h = jnp.maximum(h @ w2 + b2, 0.0)
    h = jnp.maximum(h @ w3 + b3, 0.0)
    return h @ w4 + b4


def init_params(key):
    """Deterministic init mirroring nn.Linear shapes.
    PyTorch stores weight as (out, in); we keep (in, out) so the kernel does x @ W + b."""
    dims = [(K_RAW, 512), (512, 256), (256, 128), (128, N_OUT)]
    params = []
    for i, (fan_in, fan_out) in enumerate(dims):
        kw, kb = jax.random.split(jax.random.fold_in(key, i))
        bound = 1.0 / jnp.sqrt(fan_in)
        w = jax.random.uniform(kw, (fan_in, fan_out), jnp.float32, -bound, bound)
        b = jax.random.uniform(kb, (1, fan_out), jnp.float32, -bound, bound)
        params.append((w, b))
    return params


if __name__ == "__main__":
    key = jax.random.PRNGKey(0)
    params = init_params(key)
    # Small MNIST-like batch: (B, 1, 28, 28) NCHW, flattened inside the wrapper.
    x = jax.random.normal(jax.random.fold_in(key, 100), (8, 1, 28, 28), jnp.float32)

    out = mlp_forward(x, params)
    out = jax.block_until_ready(out)
    assert out.shape == (8, 10) and out.dtype == jnp.float32

    # bf16 weights/activations + bf16 logit writeback: check against fp32 reference
    # with generous tolerance (documented precision change, not a bit-exact port).
    ref = np.asarray(mlp_reference(x, params))
    assert np.max(np.abs(np.asarray(out) - ref)) < 0.1

    # TODO(synk): Dropout(p=0.2) is treated as identity (eval/inference mode); a
    # training-mode forward would need pltpu.prng_seed + stateful_bernoulli masking.
    print("KERNEL_OK")
</pallas_src>

<mosaic_0001>
module attributes {stable_mosaic.version = 11 : i64} {
  func.func @mlp_kernel(%arg0: i32, %arg1: memref<8x784xf32, #tpu.memory_space<vmem>>, %arg2: memref<784x512xbf16, #tpu.memory_space<vmem>>, %arg3: memref<1x512xf32, #tpu.memory_space<vmem>>, %arg4: memref<512x256xbf16, #tpu.memory_space<vmem>>, %arg5: memref<1x256xf32, #tpu.memory_space<vmem>>, %arg6: memref<256x128xbf16, #tpu.memory_space<vmem>>, %arg7: memref<1x128xf32, #tpu.memory_space<vmem>>, %arg8: memref<128x128xbf16, #tpu.memory_space<vmem>>, %arg9: memref<1x128xf32, #tpu.memory_space<vmem>>, %arg10: memref<8x128xbf16, #tpu.memory_space<vmem>>) attributes {dimension_semantics = [#tpu.dimension_semantics<parallel>], iteration_bounds = array<i64: 1>, scalar_prefetch = 0 : i64, scratch_operands = 0 : i64, tpu.core_type = #tpu.core_type<tc>, window_params = [{transform_indices = @transform_0, window_bounds = array<i64: 8, 784>}, {pipeline_mode = #tpu.pipeline_mode<synchronous>, transform_indices = @transform_1, window_bounds = array<i64: 784, 512>}, {pipeline_mode = #tpu.pipeline_mode<synchronous>, transform_indices = @transform_2, window_bounds = array<i64: 1, 512>}, {pipeline_mode = #tpu.pipeline_mode<synchronous>, transform_indices = @transform_3, window_bounds = array<i64: 512, 256>}, {pipeline_mode = #tpu.pipeline_mode<synchronous>, transform_indices = @transform_4, window_bounds = array<i64: 1, 256>}, {pipeline_mode = #tpu.pipeline_mode<synchronous>, transform_indices = @transform_5, window_bounds = array<i64: 256, 128>}, {pipeline_mode = #tpu.pipeline_mode<synchronous>, transform_indices = @transform_6, window_bounds = array<i64: 1, 128>}, {pipeline_mode = #tpu.pipeline_mode<synchronous>, transform_indices = @transform_7, window_bounds = array<i64: 128, 128>}, {pipeline_mode = #tpu.pipeline_mode<synchronous>, transform_indices = @transform_8, window_bounds = array<i64: 1, 128>}, {transform_indices = @transform_9, window_bounds = array<i64: 8, 128>}]} {
    %c0 = arith.constant 0 : index
    %c0_0 = arith.constant 0 : index
    %0 = vector.load %arg1[%c0, %c0_0] : memref<8x784xf32, #tpu.memory_space<vmem>>, vector<8x784xf32>
    %1 = arith.truncf %0 : vector<8x784xf32> to vector<8x784xbf16>
    %c0_1 = arith.constant 0 : index
    %c0_2 = arith.constant 0 : index
    %2 = vector.load %arg2[%c0_1, %c0_2] : memref<784x512xbf16, #tpu.memory_space<vmem>>, vector<784x512xbf16>
    %cst = arith.constant dense<0.000000e+00> : vector<8x512xf32>
    %3 = tpu.matmul %1, %2, %cst {dimension_numbers = #tpu.dot_dimension_numbers<[1], [0], [0], [1], [0, 0, 1, 1], [], []>} : vector<8x784xbf16>, vector<784x512xbf16>, vector<8x512xf32> -> vector<8x512xf32>
    %c0_3 = arith.constant 0 : index
    %c0_4 = arith.constant 0 : index
    %4 = vector.load %arg3[%c0_3, %c0_4] : memref<1x512xf32, #tpu.memory_space<vmem>>, vector<1x512xf32>
    %5 = vector.broadcast %4 : vector<1x512xf32> to vector<8x512xf32>
    %6 = arith.addf %3, %5 : vector<8x512xf32>
    %cst_5 = arith.constant 0.000000e+00 : f32
    %7 = vector.broadcast %cst_5 : f32 to vector<8x512xf32>
    %8 = arith.maximumf %6, %7 : vector<8x512xf32>
    %9 = arith.truncf %8 : vector<8x512xf32> to vector<8x512xbf16>
    %c0_6 = arith.constant 0 : index
    %c0_7 = arith.constant 0 : index
    %10 = vector.load %arg4[%c0_6, %c0_7] : memref<512x256xbf16, #tpu.memory_space<vmem>>, vector<512x256xbf16>
    %cst_8 = arith.constant dense<0.000000e+00> : vector<8x256xf32>
    %11 = tpu.matmul %9, %10, %cst_8 {dimension_numbers = #tpu.dot_dimension_numbers<[1], [0], [0], [1], [0, 0, 1, 1], [], []>} : vector<8x512xbf16>, vector<512x256xbf16>, vector<8x256xf32> -> vector<8x256xf32>
    %c0_9 = arith.constant 0 : index
    %c0_10 = arith.constant 0 : index
    %12 = vector.load %arg5[%c0_9, %c0_10] : memref<1x256xf32, #tpu.memory_space<vmem>>, vector<1x256xf32>
    %13 = vector.broadcast %12 : vector<1x256xf32> to vector<8x256xf32>
    %14 = arith.addf %11, %13 : vector<8x256xf32>
    %cst_11 = arith.constant 0.000000e+00 : f32
    %15 = vector.broadcast %cst_11 : f32 to vector<8x256xf32>
    %16 = arith.maximumf %14, %15 : vector<8x256xf32>
    %17 = arith.truncf %16 : vector<8x256xf32> to vector<8x256xbf16>
    %c0_12 = arith.constant 0 : index
    %c0_13 = arith.constant 0 : index
    %18 = vector.load %arg6[%c0_12, %c0_13] : memref<256x128xbf16, #tpu.memory_space<vmem>>, vector<256x128xbf16>
    %cst_14 = arith.constant dense<0.000000e+00> : vector<8x128xf32>
    %19 = tpu.matmul %17, %18, %cst_14 {dimension_numbers = #tpu.dot_dimension_numbers<[1], [0], [0], [1], [0, 0, 1, 1], [], []>} : vector<8x256xbf16>, vector<256x128xbf16>, vector<8x128xf32> -> vector<8x128xf32>
    %c0_15 = arith.constant 0 : index
    %c0_16 = arith.constant 0 : index
    %20 = vector.load %arg7[%c0_15, %c0_16] : memref<1x128xf32, #tpu.memory_space<vmem>>, vector<1x128xf32>
    %21 = vector.broadcast %20 : vector<1x128xf32> to vector<8x128xf32>
    %22 = arith.addf %19, %21 : vector<8x128xf32>
    %cst_17 = arith.constant 0.000000e+00 : f32
    %23 = vector.broadcast %cst_17 : f32 to vector<8x128xf32>
    %24 = arith.maximumf %22, %23 : vector<8x128xf32>
    %25 = arith.truncf %24 : vector<8x128xf32> to vector<8x128xbf16>
    %c0_18 = arith.constant 0 : index
    %c0_19 = arith.constant 0 : index
    %26 = vector.load %arg8[%c0_18, %c0_19] : memref<128x128xbf16, #tpu.memory_space<vmem>>, vector<128x128xbf16>
    %cst_20 = arith.constant dense<0.000000e+00> : vector<8x128xf32>
    %27 = tpu.matmul %25, %26, %cst_20 {dimension_numbers = #tpu.dot_dimension_numbers<[1], [0], [0], [1], [0, 0, 1, 1], [], []>} : vector<8x128xbf16>, vector<128x128xbf16>, vector<8x128xf32> -> vector<8x128xf32>
    %c0_21 = arith.constant 0 : index
    %c0_22 = arith.constant 0 : index
    %28 = vector.load %arg9[%c0_21, %c0_22] : memref<1x128xf32, #tpu.memory_space<vmem>>, vector<1x128xf32>
    %29 = vector.broadcast %28 : vector<1x128xf32> to vector<8x128xf32>
    %30 = arith.addf %27, %29 : vector<8x128xf32>
    %31 = arith.truncf %30 : vector<8x128xf32> to vector<8x128xbf16>
    %c0_23 = arith.constant 0 : index
    %c0_24 = arith.constant 0 : index
    %32 = vector.load %arg10[%c0_23, %c0_24] : memref<8x128xbf16, #tpu.memory_space<vmem>>, vector<8x128xbf16>
    tpu.vector_store %arg10[%c0_23, %c0_24], %31 {strides = array<i32>} : memref<8x128xbf16, #tpu.memory_space<vmem>>, vector<8x128xbf16>,
    return
  }
  func.func @transform_0(%arg0: i32) -> (i32, i32) {
    %c0_i32 = arith.constant 0 : i32
    %c0_i32_0 = arith.constant 0 : i32
    return %arg0, %c0_i32 : i32, i32
  }
  func.func @transform_1(%arg0: i32) -> (i32, i32) {
    %c0_i32 = arith.constant 0 : i32
    %c0_i32_0 = arith.constant 0 : i32
    %c0_i32_1 = arith.constant 0 : i32
    return %c0_i32, %c0_i32_0 : i32, i32
  }
  func.func @transform_2(%arg0: i32) -> (i32, i32) {
    %c0_i32 = arith.constant 0 : i32
    %c0_i32_0 = arith.constant 0 : i32
    %c0_i32_1 = arith.constant 0 : i32
    return %c0_i32, %c0_i32_0 : i32, i32
  }
  func.func @transform_3(%arg0: i32) -> (i32, i32) {
    %c0_i32 = arith.constant 0 : i32
    %c0_i32_0 = arith.constant 0 : i32
    %c0_i32_1 = arith.constant 0 : i32
    return %c0_i32, %c0_i32_0 : i32, i32
  }
  func.func @transform_4(%arg0: i32) -> (i32, i32) {
    %c0_i32 = arith.constant 0 : i32
    %c0_i32_0 = arith.constant 0 : i32
    %c0_i32_1 = arith.constant 0 : i32
    return %c0_i32, %c0_i32_0 : i32, i32
  }
  func.func @transform_5(%arg0: i32) -> (i32, i32) {
    %c0_i32 = arith.constant 0 : i32
    %c0_i32_0 = arith.constant 0 : i32
    %c0_i32_1 = arith.constant 0 : i32
    return %c0_i32, %c0_i32_0 : i32, i32
  }
  func.func @transform_6(%arg0: i32) -> (i32, i32) {
    %c0_i32 = arith.constant 0 : i32
    %c0_i32_0 = arith.constant 0 : i32
    %c0_i32_1 = arith.constant 0 : i32
    return %c0_i32, %c0_i32_0 : i32, i32
  }
  func.func @transform_7(%arg0: i32) -> (i32, i32) {
    %c0_i32 = arith.constant 0 : i32
    %c0_i32_0 = arith.constant 0 : i32
    %c0_i32_1 = arith.constant 0 : i32
    return %c0_i32, %c0_i32_0 : i32, i32
  }
  func.func @transform_8(%arg0: i32) -> (i32, i32) {
    %c0_i32 = arith.constant 0 : i32
    %c0_i32_0 = arith.constant 0 : i32
    %c0_i32_1 = arith.constant 0 : i32
    return %c0_i32, %c0_i32_0 : i32, i32
  }
  func.func @transform_9(%arg0: i32) -> (i32, i32) {
    %c0_i32 = arith.constant 0 : i32
    %c0_i32_0 = arith.constant 0 : i32
    return %arg0, %c0_i32 : i32, i32
  }
}

</mosaic_0001>

<bundles_post_ra>
// kernel: tpu_custom_call.1
= control target key start
LH: loop header
LB: loop body
LE: loop exit
PB: predicated region body
PF: predicated region fallthrough
CT: control target
= control target key end

     0   :  { %14 = vsyncpa [#allocation3], 0  ;;  %s3515_s0 = inlined_call_operand.hbm [shape: f32[8,784], index: 0, kind: input, shape index: {}]   ;;  %s3516_s1 = inlined_call_operand.hbm [shape: bf16[784,512], index: 1, kind: input, shape index: {}]   ;;  %s3517_s2 = inlined_call_operand.hbm [shape: f32[1,512], index: 2, kind: input, shape index: {}]   ;;  %s3518_s3 = inlined_call_operand.hbm [shape: bf16[512,256], index: 3, kind: input, shape index: {}]   ;;  %s3519_s4 = inlined_call_operand.vmem [shape: f32[1,256], index: 4, kind: input, shape index: {}]   ;;  %s3520_s5 = inlined_call_operand.hbm [shape: bf16[256,128], index: 5, kind: input, shape index: {}]   ;;  %s3521_s6 = inlined_call_operand.vmem [shape: f32[1,128], index: 6, kind: input, shape index: {}]   ;;  %s3522_s7 = inlined_call_operand.hbm [shape: bf16[128,128], index: 7, kind: input, shape index: {}]   ;;  %s3523_s8 = inlined_call_operand.vmem [shape: f32[1,128], index: 8, kind: input, shape index: {}]   ;;  %s3524_s9 = inlined_call_operand.hbm [shape: bf16[8,128], index: 9, kind: output, shape index: {}]  }
   0x1   :  { %15 = vsyncpa [#allocation6], 0 }
   0x2   :  { %16 = vsyncpa [#allocation9], 0 }
   0x3   :  { %17 = vsyncpa [#allocation12], 0 }
   0x4   :  { %18 = vsyncpa [#allocation4], 0  ;;  %s3373_s30 = smov [#allocation5]  }
   0x5   :  { %s34_s10 = sshll.u32 %s3373_s30, 4  ;;  %s35_s10 = int_to_ptr.vmem [resolvable:$true] %s34_s10 }
   0x6   :  { %s3231_s11 = scalar_lea.vmem %s35_s10, 25088  ;;  %p3236_p1 = scmp.lt.s32.totalorder %s35_s10, %s35_s10 }
   0x7   :  { %p3232_p0 = scmp.ne.s32.totalorder %s35_s10, %s3231_s11  ;;  %p3237_p2 = scmp.lt.s32.totalorder %s3231_s11, %s3231_s11 }
   0x9   :  { %p3238_p3 = por %p3237_p2, %p3236_p1 }
   0xb   :  { %p3239_p4 = pnand %p3238_p3, %p3232_p0 }
   0xd   :  { %3242 = shalt.err (!%p3239_p4)
}
   0xe   :  { %s3374_s12 = smov 256   ;;  %s3375_s13 = smov 16  }
   0xf   :  { %40 = dma.hbm_to_vmem [thread:$0]  %s3516_s1, 25088, %s35_s10, [#allocation6], %s3374_s12, %s3374_s12, %s3375_s13  }
  0x10   :  { %s3376_s16 = smov [#allocation8]  }
  0x11   :  { %s56_s17 = sshll.u32 %s3376_s16, 4  ;;  %s57_s17 = int_to_ptr.vmem [resolvable:$true] %s56_s17 }
  0x12   :  { %s3251_s18 = scalar_lea.vmem %s57_s17, 8192  ;;  %p3256_p6 = scmp.lt.s32.totalorder %s57_s17, %s57_s17 }
  0x13   :  { %p3252_p5 = scmp.ne.s32.totalorder %s57_s17, %s3251_s18  ;;  %p3257_p7 = scmp.lt.s32.totalorder %s3251_s18, %s3251_s18 }
  0x15   :  { %p3258_p8 = por %p3257_p7, %p3256_p6 }
  0x17   :  { %p3259_p9 = pnand %p3258_p8, %p3252_p5 }
  0x19   :  { %3262 = shalt.err (!%p3259_p9)
}
  0x1a   :  { %s3377_s19 = smov 128   ;;  %s3378_s20 = smov 8  }
  0x1b   :  { %62 = dma.hbm_to_vmem [thread:$0]  %s3518_s3, 8192, %s57_s17, [#allocation9], %s3377_s19, %s3377_s19, %s3378_s20  }
  0x1c   :  { %s3379_s23 = smov [#allocation2]   ;;  %s3380_s25 = smov [#allocation7]  }
  0x1d   :  { %s25_s24 = sshll.u32 %s3379_s23, 4  ;;  %s47_s1 = sshll.u32 %s3380_s25, 4  ;;  %s26_s24 = int_to_ptr.vmem [resolvable:$true] %s25_s24  ;;  %s48_s1 = int_to_ptr.vmem [resolvable:$true] %s47_s1 }
  0x1e   :  { %s3271_s26 = scalar_lea.vmem %s26_s24, 896  ;;  %p3276_p11 = scmp.lt.s32.totalorder %s26_s24, %s26_s24 }
  0x1f   :  { %p3272_p10 = scmp.ne.s32.totalorder %s26_s24, %s3271_s26  ;;  %p3277_p12 = scmp.lt.s32.totalorder %s3271_s26, %s3271_s26 }
  0x21   :  { %p3278_p13 = por %p3277_p12, %p3276_p11 }
  0x23   :  { %p3279_p0 = pnand %p3278_p13, %p3272_p10 }
  0x25   :  { %3282 = shalt.err (!%p3279_p0)
}
  0x26   :  { %28 = dma.hbm_to_vmem [thread:$0]  %s3515_s0, 896, %s26_s24, [#allocation3]  }
  0x27   :  { %s3291_s29 = scalar_lea.vmem %s48_s1, 64  ;;  %p3296_p2 = scmp.lt.s32.totalorder %s48_s1, %s48_s1 }
  0x28   :  { %p3292_p1 = scmp.ne.s32.totalorder %s48_s1, %s3291_s29  ;;  %p3297_p3 = scmp.lt.s32.totalorder %s3291_s29, %s3291_s29 }
  0x2a   :  { %p3298_p4 = por %p3297_p3, %p3296_p2 }
  0x2c   :  { %p3299_p5 = pnand %p3298_p4, %p3292_p1 }
  0x2e   :  { %3302 = shalt.err (!%p3299_p5)
}
  0x2f   :  { %50 = dma.hbm_to_vmem [thread:$0]  %s3517_s2, 64, %s48_s1, [#allocation6]  }
  0x30   :  { %s3381_s10 = smov [#allocation10]  }
  0x31   :  { %s70_s11 = sshll.u32 %s3381_s10, 4  ;;  %s71_s11 = int_to_ptr.vmem [resolvable:$true] %s70_s11 }
  0x32   :  { %s3311_s12 = scalar_lea.vmem %s71_s11, 2048  ;;  %p3316_p7 = scmp.lt.s32.totalorder %s71_s11, %s71_s11 }
  0x33   :  { %p3312_p6 = scmp.ne.s32.totalorder %s71_s11, %s3311_s12  ;;  %p3317_p8 = scmp.lt.s32.totalorder %s3311_s12, %s3311_s12 }
  0x35   :  { %p3318_p9 = por %p3317_p8, %p3316_p7 }
  0x37   :  { %p3319_p10 = pnand %p3318_p9, %p3312_p6 }
  0x39   :  { %3322 = shalt.err (!%p3319_p10)
}
  0x3a   :  { %s3382_s0 = smov 64   ;;  %s3383_s13 = smov 4  }
  0x3b   :  { %76 = dma.hbm_to_vmem [thread:$0]  %s3520_s5, 2048, %s71_s11, [#allocation9], %s3382_s0, %s3382_s0, %s3383_s13  }
  0x3c   :  { %s3384_s16 = smov [#allocation11]  }
  0x3d   :  { %s84_s17 = sshll.u32 %s3384_s16, 4  ;;  %s85_s17 = int_to_ptr.vmem [resolvable:$true] %s84_s17 }
  0x3e   :  { %s3331_s2 = scalar_lea.vmem %s85_s17, 1024  ;;  %p3336_p12 = scmp.lt.s32.totalorder %s85_s17, %s85_s17 }
  0x3f   :  { %p3332_p11 = scmp.ne.s32.totalorder %s85_s17, %s3331_s2  ;;  %p3337_p13 = scmp.lt.s32.totalorder %s3331_s2, %s3331_s2 }
  0x41   :  { %p3338_p0 = por %p3337_p13, %p3336_p12 }
  0x43   :  { %p3339_p1 = pnand %p3338_p0, %p3332_p11 }
  0x45   :  { %3342 = shalt.err (!%p3339_p1)
}
  0x46   :  { %90 = dma.hbm_to_vmem [thread:$0]  %s3522_s7, 1024, %s85_s17, [#allocation12], %s3382_s0, %s3382_s0, %s3383_s13  }
  0x47   :  { %3363 = dma.done.wait [#allocation3], 896  }
  0x48   :  { %3364 = vsyncadd [#allocation3], 4294966400 }
  0x49   :  { %3365 = dma.done.wait [#allocation6], 25152  }
  0x4a   :  { %3366 = vsyncadd [#allocation6], 4294942144 }
  0x4b   :  { %3367 = dma.done.wait [#allocation9], 10240  }
  0x4c   :  { %3368 = vsyncadd [#allocation9], 4294957056 }
  0x4d   :  { %3369 = dma.done.wait [#allocation12], 1024  }
  0x4e   :  { %3370 = vsyncadd [#allocation12], 4294966272  ;;  %v2809_v0 = vld [vmem:[#allocation5 + $0xe4] ss:$16 sps:$4 sm:$0xff]   ;;  %v2813_v2 = vld [vmem:[#allocation5 + $0xe0] ss:$16 sps:$4 sm:$0xff]  }
  0x4f   :  { %v2811_v1 = vld [vmem:[#allocation5 + $0x2e4] ss:$16 sps:$4 sm:$0xff]   ;;  %1328 = vmatprep.subr.bf16.mxu0 %v2809_v0  ;;  %v2814_v3 = vld [vmem:[#allocation5 + $0x2e0] ss:$16 sps:$4 sm:$0xff]   ;;  %vm1324_vm0 = vcmask 130048   ;;  %vm3387_vm1 = vmmov 0  }
  0x50   :  { %1369 = vmatprep.subr.bf16.mxu1 %v2811_v1  ;;  %v2815_v4 = vld [vmem:[#allocation5 + $0xc4] ss:$16 sps:$4 sm:$0xff]   ;;  %1329 = vmatpush1.bf16.msra.mxu0 %v2813_v2  ;;  %v2819_v6 = vld [vmem:[#allocation5 + $0xc0] ss:$16 sps:$4 sm:$0xff]   ;;  %s3388_s23 = smov [#allocation13]  }
  0x51   :  { %1370 = vmatpush1.bf16.msra.mxu1 %v2814_v3  ;;  %v2817_v5 = vld [vmem:[#allocation5 + $0x2c4] ss:$16 sps:$4 sm:$0xff]   ;;  %1330 = vmatprep.subr.bf16.mxu0 %v2815_v4  ;;  %v2820_v7 = vld [vmem:[#allocation5 + $0x2c0] ss:$16 sps:$4 sm:$0xff]   ;;  %v112_v4 = vld [vmem:[#allocation2] sm:$0xff]  ;;  %s2442_s24 = sshll.u32 %s3388_s23, 4  ;;  %s2443_s24 = int_to_ptr.vmem [resolvable:$true] %s2442_s24 }
  0x52   :  { %1371 = vmatprep.subr.bf16.mxu1 %v2817_v5  ;;  %v2821_v8 = vld [vmem:[#allocation5 + $0xa4] ss:$16 sps:$4 sm:$0xff]   ;;  %v2825_v10 = vld [vmem:[#allocation5 + $0xa0] ss:$16 sps:$4 sm:$0xff]   ;;  %v114_v5 = vld [vmem:[#allocation2 + $0x10] sm:$0xff]  ;;  %p3348_p3 = scmp.lt.s32.totalorder %s2443_s24, %s2443_s24 }
  0x53   :  { %v2823_v9 = vld [vmem:[#allocation5 + $0x2a4] ss:$16 sps:$4 sm:$0xff]   ;;  %v2826_v11 = vld [vmem:[#allocation5 + $0x2a0] ss:$16 sps:$4 sm:$0xff]  }
  0x54   :  { %1331 = vmatpush1.bf16.msra.mxu0 %v2819_v6  ;;  %v2827_v12 = vld [vmem:[#allocation5 + $0x84] ss:$16 sps:$4 sm:$0xff]   ;;  %v2831_v14 = vld [vmem:[#allocation5 + $0x80] ss:$16 sps:$4 sm:$0xff]  }
  0x55   :  { %1372 = vmatpush1.bf16.msra.mxu1 %v2820_v7  ;;  %1332 = vmatprep.subr.bf16.mxu0 %v2821_v8  ;;  %v2829_v13 = vld [vmem:[#allocation5 + $0x284] ss:$16 sps:$4 sm:$0xff]   ;;  %v2832_v15 = vld [vmem:[#allocation5 + $0x280] ss:$16 sps:$4 sm:$0xff]   ;;  %v3463_v8 = vpack.c.bf16 %v112_v4, %v112_v4  ;;  %v2988_v4 = vld [vmem:[#allocation5 + $0x16c] ss:$16 sps:$4 sm:$0xff]  }
  0x56   :  { %1373 = vmatprep.subr.bf16.mxu1 %v2823_v9  ;;  %v2833_v16 = vld [vmem:[#allocation5 + $0x64] ss:$16 sps:$4 sm:$0xff]   ;;  %v2837_v18 = vld [vmem:[#allocation5 + $0x60] ss:$16 sps:$4 sm:$0xff]   ;;  %v3465_v9 = vpack.c.bf16 %v114_v5, %v114_v5 }
  0x57   :  { %v2835_v17 = vld [vmem:[#allocation5 + $0x264] ss:$16 sps:$4 sm:$0xff]   ;;  %v2838_v19 = vld [vmem:[#allocation5 + $0x260] ss:$16 sps:$4 sm:$0xff]  }
  0x58   :  { %1333 = vmatpush1.bf16.msra.mxu0 %v2825_v10  ;;  %v2839_v20 = vld [vmem:[#allocation5 + $0x44] ss:$16 sps:$4 sm:$0xff]   ;;  %v2843_v22 = vld [vmem:[#allocation5 + $0x40] ss:$16 sps:$4 sm:$0xff]  }
  0x59   :  { %1374 = vmatpush1.bf16.msra.mxu1 %v2826_v11  ;;  %1334 = vmatprep.subr.bf16.mxu0 %v2827_v12  ;;  %v2841_v21 = vld [vmem:[#allocation5 + $0x244] ss:$16 sps:$4 sm:$0xff]   ;;  %v2844_v23 = vld [vmem:[#allocation5 + $0x240] ss:$16 sps:$4 sm:$0xff]  }
  0x5a   :  { %1375 = vmatprep.subr.bf16.mxu1 %v2829_v13  ;;  %v2845_v24 = vld [vmem:[#allocation5 + $0x24] ss:$16 sps:$4 sm:$0xff]   ;;  %v2849_v26 = vld [vmem:[#allocation5 + $0x20] ss:$16 sps:$4 sm:$0xff]   ;;  %v2916_v13 = vld [vmem:[#allocation5 + $0xec] ss:$16 sps:$4 sm:$0xff]  }
  0x5b   :  { %v2847_v25 = vld [vmem:[#allocation5 + $0x224] ss:$16 sps:$4 sm:$0xff]   ;;  %v2850_v27 = vld [vmem:[#allocation5 + $0x220] ss:$16 sps:$4 sm:$0xff]  }
  0x5c   :  { %1335 = vmatpush1.bf16.msra.mxu0 %v2831_v14  ;;  %v2851_v28 = vld [vmem:[#allocation5 + $0x4] ss:$16 sps:$4 sm:$0xff]   ;;  %v2855_v30 = vld [vmem:[#allocation5] ss:$16 sps:$4 sm:$0xff]  }
  0x5d   :  { %1376 = vmatpush1.bf16.msra.mxu1 %v2832_v15  ;;  %1336 = vmatprep.subr.bf16.mxu0 %v2833_v16  ;;  %v2853_v29 = vld [vmem:[#allocation5 + $0x204] ss:$16 sps:$4 sm:$0xff]   ;;  %v2856_v31 = vld [vmem:[#allocation5 + $0x200] ss:$16 sps:$4 sm:$0xff]   ;;  %v118_v15 = vld [vmem:[#allocation2 + $0x30] sm:$0xff]  ;;  %v3385_v16 = vmov 0  }
  0x5e   :  { %1377 = vmatprep.subr.bf16.mxu1 %v2835_v17  ;;  %v2857_v32 = vld [vmem:[#allocation5 + $0x1e4] ss:$16 sps:$4 sm:$0xff]   ;;  %v2861_v34 = vld [vmem:[#allocation5 + $0x1e0] ss:$16 sps:$4 sm:$0xff]  }
  0x5f   :  { %v2859_v33 = vld [vmem:[#allocation5 + $0x3e4] ss:$16 sps:$4 sm:$0xff]   ;;  %v2862_v35 = vld [vmem:[#allocation5 + $0x3e0] ss:$16 sps:$4 sm:$0xff]  }
  0x60   :  { %1337 = vmatpush1.bf16.msra.mxu0 %v2837_v18  ;;  %v2863_v36 = vld [vmem:[#allocation5 + $0x1c4] ss:$16 sps:$4 sm:$0xff]   ;;  %v2867_v38 = vld [vmem:[#allocation5 + $0x1c0] ss:$16 sps:$4 sm:$0xff]   ;;  %v2914_v18 = vld [vmem:[#allocation5 + $0xe8] ss:$16 sps:$4 sm:$0xff]  }
  0x61   :  { %1378 = vmatpush1.bf16.msra.mxu1 %v2838_v19  ;;  %1338 = vmatprep.subr.bf16.mxu0 %v2839_v20  ;;  %v2865_v37 = vld [vmem:[#allocation5 + $0x3c4] ss:$16 sps:$4 sm:$0xff]   ;;  %v2868_v39 = vld [vmem:[#allocation5 + $0x3c0] ss:$16 sps:$4 sm:$0xff]   ;;  %v3470_v19 = vpack.c.bf16 %v118_v15, %v118_v15  ;;  %v116_v15 = vld [vmem:[#allocation2 + $0x20] sm:$0xff] }
  0x62   :  { %1379 = vmatprep.subr.bf16.mxu1 %v2841_v21  ;;  %v2869_v40 = vld [vmem:[#allocation5 + $0x1a4] ss:$16 sps:$4 sm:$0xff]   ;;  %v2873_v42 = vld [vmem:[#allocation5 + $0x1a0] ss:$16 sps:$4 sm:$0xff]   ;;  %v2922_v21 = vld [vmem:[#allocation5 + $0xcc] ss:$16 sps:$4 sm:$0xff]  }
  0x63   :  { %v2871_v41 = vld [vmem:[#allocation5 + $0x3a4] ss:$16 sps:$4 sm:$0xff]   ;;  %v2874_v43 = vld [vmem:[#allocation5 + $0x3a0] ss:$16 sps:$4 sm:$0xff]  }
  0x64   :  { %1339 = vmatpush1.bf16.msra.mxu0 %v2843_v22  ;;  %v2875_v44 = vld [vmem:[#allocation5 + $0x184] ss:$16 sps:$4 sm:$0xff]   ;;  %v2879_v47 = vld [vmem:[#allocation5 + $0x180] ss:$16 sps:$4 sm:$0xff]  }
  0x65   :  { %1380 = vmatpush1.bf16.msra.mxu1 %v2844_v23  ;;  %1340 = vmatprep.subr.bf16.mxu0 %v2845_v24  ;;  %v2877_v45 = vld [vmem:[#allocation5 + $0x384] ss:$16 sps:$4 sm:$0xff]   ;;  %v2880_v48 = vld [vmem:[#allocation5 + $0x380] ss:$16 sps:$4 sm:$0xff]   ;;  %v2920_v23 = vld [vmem:[#allocation5 + $0xc8] ss:$16 sps:$4 sm:$0xff]  }
  0x66   :  { %1381 = vmatprep.subr.bf16.mxu1 %v2847_v25  ;;  %v113_v46 = vld [vmem:[#allocation2 + $0x8] sm:$0xff]  ;;  %v115_v50 = vld [vmem:[#allocation2 + $0x18] sm:$0xff]  ;;  %v2928_v25 = vld [vmem:[#allocation5 + $0xac] ss:$16 sps:$4 sm:$0xff]  }
  0x67   :  { %v3457_v49 = vpack.c.bf16 %v113_v46, %v113_v46  ;;  %v2881_v51 = vld [vmem:[#allocation5 + $0x164] ss:$16 sps:$4 sm:$0xff]   ;;  %v3459_v52 = vpack.c.bf16 %v115_v50, %v115_v50  ;;  %v2885_v54 = vld [vmem:[#allocation5 + $0x160] ss:$16 sps:$4 sm:$0xff]  }
  0x68   :  { %1341 = vmatpush1.bf16.msra.mxu0 %v2849_v26  ;;  %v2883_v53 = vld [vmem:[#allocation5 + $0x364] ss:$16 sps:$4 sm:$0xff]   ;;  %v2886_v55 = vld [vmem:[#allocation5 + $0x360] ss:$16 sps:$4 sm:$0xff]  }
  0x69   :  { %1382 = vmatpush1.bf16.msra.mxu1 %v2850_v27  ;;  %1342 = vmatprep.subr.bf16.mxu0 %v2851_v28  ;;  %v2887_v56 = vld [vmem:[#allocation5 + $0x144] ss:$16 sps:$4 sm:$0xff]   ;;  %v2891_v58 = vld [vmem:[#allocation5 + $0x140] ss:$16 sps:$4 sm:$0xff]   ;;  %v2926_v27 = vld [vmem:[#allocation5 + $0xa8] ss:$16 sps:$4 sm:$0xff]  }
  0x6a   :  { %1383 = vmatprep.subr.bf16.mxu1 %v2853_v29  ;;  %1360 = vmatprep.mubr.bf16.mxu0 %v3457_v49  ;;  %v2889_v57 = vld [vmem:[#allocation5 + $0x344] ss:$16 sps:$4 sm:$0xff]   ;;  %v2892_v59 = vld [vmem:[#allocation5 + $0x340] ss:$16 sps:$4 sm:$0xff]   ;;  %v2934_v29 = vld [vmem:[#allocation5 + $0x8c] ss:$16 sps:$4 sm:$0xff]  }
  0x6b   :  { %1401 = vmatprep.mubr.bf16.mxu1 %v3459_v52  ;;  %v2893_v60 = vld [vmem:[#allocation5 + $0x124] ss:$16 sps:$4 sm:$0xff]   ;;  %v2897_v62 = vld [vmem:[#allocation5 + $0x120] ss:$16 sps:$4 sm:$0xff]  }
  0x6c   :  { %1343 = vmatpush1.bf16.msra.mxu0 %v2855_v30  ;;  %v2895_v61 = vld [vmem:[#allocation5 + $0x324] ss:$16 sps:$4 sm:$0xff]   ;;  %v2898_v63 = vld [vmem:[#allocation5 + $0x320] ss:$16 sps:$4 sm:$0xff]  }
  0x6d   :  { %1384 = vmatpush1.bf16.msra.mxu1 %v2856_v31  ;;  %1344 = vmatprep.subr.bf16.mxu0 %v2857_v32  ;;  %v2899_v0 = vld [vmem:[#allocation5 + $0x104] ss:$16 sps:$4 sm:$0xff]   ;;  %v2903_v2 = vld [vmem:[#allocation5 + $0x100] ss:$16 sps:$4 sm:$0xff]   ;;  %v2932_v31 = vld [vmem:[#allocation5 + $0x88] ss:$16 sps:$4 sm:$0xff]  }
  0x6e   :  { %1385 = vmatprep.subr.bf16.mxu1 %v2859_v33  ;;  %v2901_v1 = vld [vmem:[#allocation5 + $0x304] ss:$16 sps:$4 sm:$0xff]   ;;  %v2904_v3 = vld [vmem:[#allocation5 + $0x300] ss:$16 sps:$4 sm:$0xff]   ;;  %v2940_v33 = vld [vmem:[#allocation5 + $0x6c] ss:$16 sps:$4 sm:$0xff]  }
  0x6f   :  { %v2907_v6 = vld [vmem:[#allocation5 + $0x4e4] ss:$16 sps:$4 sm:$0xff]   ;;  %v2905_v10 = vld [vmem:[#allocation5 + $0x4e0] ss:$16 sps:$4 sm:$0xff]  }
  0x70   :  { %1345 = vmatpush2.bf16.msra.mxu0 %v2861_v34  ;;  %v2910_v7 = vld [vmem:[#allocation5 + $0x604] ss:$16 sps:$4 sm:$0xff]   ;;  %v2908_v11 = vld [vmem:[#allocation5 + $0x600] ss:$16 sps:$4 sm:$0xff]  }
  0x71   :  { %1386 = vmatpush2.bf16.msra.mxu1 %v2862_v35  ;;  %1346 = vmatprep.subr.bf16.mxu0 %v2863_v36  ;;  %v2913_v12 = vld [vmem:[#allocation5 + $0x4c4] ss:$16 sps:$4 sm:$0xff]   ;;  %v2911_v14 = vld [vmem:[#allocation5 + $0x4c0] ss:$16 sps:$4 sm:$0xff]  }
  0x72   :  { %1387 = vmatprep.subr.bf16.mxu1 %v2865_v37  ;;  %v2919_v17 = vld [vmem:[#allocation5 + $0x4a4] ss:$16 sps:$4 sm:$0xff]   ;;  %v2917_v20 = vld [vmem:[#allocation5 + $0x4a0] ss:$16 sps:$4 sm:$0xff]   ;;  %v2938_v37 = vld [vmem:[#allocation5 + $0x68] ss:$16 sps:$4 sm:$0xff]  }
  0x73   :  { %v2925_v22 = vld [vmem:[#allocation5 + $0x484] ss:$16 sps:$4 sm:$0xff]   ;;  %v2923_v24 = vld [vmem:[#allocation5 + $0x480] ss:$16 sps:$4 sm:$0xff]  }
  0x74   :  { %1347 = vmatpush2.bf16.msra.mxu0 %v2867_v38  ;;  %v2931_v26 = vld [vmem:[#allocation5 + $0x464] ss:$16 sps:$4 sm:$0xff]   ;;  %v2929_v28 = vld [vmem:[#allocation5 + $0x460] ss:$16 sps:$4 sm:$0xff]  }
  0x75   :  { %1388 = vmatpush2.bf16.msra.mxu1 %v2868_v39  ;;  %1348 = vmatprep.subr.bf16.mxu0 %v2869_v40  ;;  %v2937_v30 = vld [vmem:[#allocation5 + $0x444] ss:$16 sps:$4 sm:$0xff]   ;;  %v2935_v32 = vld [vmem:[#allocation5 + $0x440] ss:$16 sps:$4 sm:$0xff]   ;;  %v2946_v39 = vld [vmem:[#allocation5 + $0x4c] ss:$16 sps:$4 sm:$0xff]  }
  0x76   :  { %1389 = vmatprep.subr.bf16.mxu1 %v2871_v41  ;;  %v2943_v34 = vld [vmem:[#allocation5 + $0x424] ss:$16 sps:$4 sm:$0xff]   ;;  %v2941_v38 = vld [vmem:[#allocation5 + $0x420] ss:$16 sps:$4 sm:$0xff]   ;;  %v2944_v41 = vld [vmem:[#allocation5 + $0x48] ss:$16 sps:$4 sm:$0xff]  }
  0x77   :  { %v117_v35 = vld [vmem:[#allocation2 + $0x28] sm:$0xff] }
  0x78   :  { %1349 = vmatpush2.bf16.msra.mxu0 %v2873_v42  ;;  %v3475_v36 = vpack.c.bf16 %v117_v35, %v117_v35  ;;  %v2949_v40 = vld [vmem:[#allocation5 + $0x404] ss:$16 sps:$4 sm:$0xff]   ;;  %v2947_v42 = vld [vmem:[#allocation5 + $0x400] ss:$16 sps:$4 sm:$0xff]   ;;  %v3027_v35 = vld [vmem:[#allocation5 + $0x26c] ss:$16 sps:$4 sm:$0xff]  }
  0x79   :  { %1390 = vmatpush2.bf16.msra.mxu1 %v2874_v43  ;;  %1350 = vmatprep.subr.bf16.mxu0 %v2875_v44  ;;  %v2952_v43 = vld [vmem:[#allocation5 + $0x2c] ss:$16 sps:$4 sm:$0xff]   ;;  %v2955_v44 = vld [vmem:[#allocation5 + $0x5e4] ss:$16 sps:$4 sm:$0xff]   ;;  %v2953_v46 = vld [vmem:[#allocation5 + $0x5e0] ss:$16 sps:$4 sm:$0xff]  }
  0x7a   :  { %1391 = vmatprep.subr.bf16.mxu1 %v2877_v45  ;;  %v2950_v45 = vld [vmem:[#allocation5 + $0x28] ss:$16 sps:$4 sm:$0xff]   ;;  %v2959_v50 = vld [vmem:[#allocation5 + $0x5c0] ss:$16 sps:$4 sm:$0xff]   ;;  %v2991_v5 = vld [vmem:[#allocation5 + $0x524] ss:$16 sps:$4 sm:$0xff]  }
  0x7c   :  { %1351 = vmatpush2.bf16.msra.mxu0 %v2879_v47  ;;  %v2958_v47 = vld [vmem:[#allocation5 + $0xc] ss:$16 sps:$4 sm:$0xff]  }
  0x7d   :  { %1392 = vmatpush2.bf16.msra.mxu1 %v2880_v48  ;;  %1352 = vmatprep.subr.bf16.mxu0 %v2881_v51  ;;  %v2961_v48 = vld [vmem:[#allocation5 + $0x5c4] ss:$16 sps:$4 sm:$0xff]   ;;  %v2964_v51 = vld [vmem:[#allocation5 + $0x1ec] ss:$16 sps:$4 sm:$0xff]  }
  0x7e   :  { %1393 = vmatprep.subr.bf16.mxu1 %v2883_v53  ;;  %v2967_v53 = vld [vmem:[#allocation5 + $0x5a4] ss:$16 sps:$4 sm:$0xff]  }
  0x80   :  { %1353 = vmatpush2.bf16.msra.mxu0 %v2885_v54  ;;  %v2962_v54 = vld [vmem:[#allocation5 + $0x1e8] ss:$16 sps:$4 sm:$0xff]  }
  0x81   :  { %1394 = vmatpush2.bf16.msra.mxu1 %v2886_v55  ;;  %1354 = vmatprep.subr.bf16.mxu0 %v2887_v56  ;;  %v2965_v55 = vld [vmem:[#allocation5 + $0x5a0] ss:$16 sps:$4 sm:$0xff]   ;;  %v2970_v56 = vld [vmem:[#allocation5 + $0x1cc] ss:$16 sps:$4 sm:$0xff]  }
  0x82   :  { %1395 = vmatprep.subr.bf16.mxu1 %v2889_v57  ;;  %v2973_v57 = vld [vmem:[#allocation5 + $0x584] ss:$16 sps:$4 sm:$0xff]  }
  0x84   :  { %1355 = vmatpush2.bf16.msra.mxu0 %v2891_v58  ;;  %v2968_v58 = vld [vmem:[#allocation5 + $0x1c8] ss:$16 sps:$4 sm:$0xff]  }
  0x85   :  { %1396 = vmatpush2.bf16.msra.mxu1 %v2892_v59  ;;  %1356 = vmatprep.subr.bf16.mxu0 %v2893_v60  ;;  %v2971_v59 = vld [vmem:[#allocation5 + $0x580] ss:$16 sps:$4 sm:$0xff]   ;;  %v2976_v60 = vld [vmem:[#allocation5 + $0x1ac] ss:$16 sps:$4 sm:$0xff]  }
  0x86   :  { %1397 = vmatprep.subr.bf16.mxu1 %v2895_v61  ;;  %v2979_v61 = vld [vmem:[#allocation5 + $0x564] ss:$16 sps:$4 sm:$0xff]  }
  0x88   :  { %1357 = vmatpush2.bf16.msra.mxu0 %v2897_v62  ;;  %v2974_v62 = vld [vmem:[#allocation5 + $0x1a8] ss:$16 sps:$4 sm:$0xff]  }
  0x89   :  { %1398 = vmatpush2.bf16.msra.mxu1 %v2898_v63  ;;  %1358 = vmatprep.subr.bf16.mxu0 %v2899_v0  ;;  %v2977_v63 = vld [vmem:[#allocation5 + $0x560] ss:$16 sps:$4 sm:$0xff]   ;;  %v2982_v0 = vld [vmem:[#allocation5 + $0x18c] ss:$16 sps:$4 sm:$0xff]  }
  0x8a   :  { %1399 = vmatprep.subr.bf16.mxu1 %v2901_v1  ;;  %v2985_v1 = vld [vmem:[#allocation5 + $0x544] ss:$16 sps:$4 sm:$0xff]  }
  0x8c   :  { %1359 = vmatpush2.bf16.msra.mxu0 %v2903_v2  ;;  %v2980_v2 = vld [vmem:[#allocation5 + $0x188] ss:$16 sps:$4 sm:$0xff]  }
  0x8d   :  { %1400 = vmatpush2.bf16.msra.mxu1 %v2904_v3  ;;  %1410 = vmatprep.subr.bf16.mxu0 %v2907_v6  ;;  %v2983_v3 = vld [vmem:[#allocation5 + $0x540] ss:$16 sps:$4 sm:$0xff]   ;;  %v2986_v6 = vld [vmem:[#allocation5 + $0x168] ss:$16 sps:$4 sm:$0xff]  }
  0x8e   :  { %1465 = vmatprep.subr.bf16.mxu1 %v2910_v7  ;;  %v2989_v7 = vld [vmem:[#allocation5 + $0x520] ss:$16 sps:$4 sm:$0xff]  }
  0x8f   :  { %1361 = vmatmul.mubr.bf16.vlgmr.msra.gmra.mxu0 %v3463_v8 }
  0x90   :  { %1402 = vmatmul.mubr.bf16.vlgmr.msra.gmra.mxu1 %v3465_v9  ;;  %1411 = vmatpush1.bf16.msra.mxu0 %v2905_v10  ;;  %v2994_v10 = vld [vmem:[#allocation5 + $0x14c] ss:$16 sps:$4 sm:$0xff]  }
  0x91   :  { %1466 = vmatpush1.bf16.msra.mxu1 %v2908_v11  ;;  %1412 = vmatprep.subr.bf16.mxu0 %v2913_v12  ;;  %v2997_v11 = vld [vmem:[#allocation5 + $0x504] ss:$16 sps:$4 sm:$0xff]   ;;  %v2992_v12 = vld [vmem:[#allocation5 + $0x148] ss:$16 sps:$4 sm:$0xff]  }
  0x92   :  { %1483 = vmatprep.mubr.bf16.mxu1 %v3385_v16  ;;  %1492 = vmatprep.subr.bf16.mxu1 %v2916_v13  ;;  %v2995_v13 = vld [vmem:[#allocation5 + $0x500] ss:$16 sps:$4 sm:$0xff]  }
  0x93   :  { %1442 = vmatprep.mubr.bf16.mxu0 %v3475_v36 }
  0x94   :  { %1413 = vmatpush1.bf16.msra.mxu0 %v2911_v14  ;;  %v3000_v14 = vld [vmem:[#allocation5 + $0x12c] ss:$16 sps:$4 sm:$0xff]  }
  0x95   :  { %1414 = vmatprep.subr.bf16.mxu0 %v2919_v17  ;;  %v3003_v17 = vld [vmem:[#allocation5 + $0x2ec] ss:$16 sps:$4 sm:$0xff]  }
  0x98   :  { %2650 = vmatmul.mubr.msk.bf16.vlgmr.msra.gmra.mxu1 %vm1324_vm0, %v3470_v19  ;;  %1415 = vmatpush1.bf16.msra.mxu0 %v2917_v20  ;;  %v3478_v20 = vpack.c.bf16 %v116_v15, %v116_v15  ;;  %v3090_v15 = vld [vmem:[#allocation5 + $0x54c] ss:$16 sps:$4 sm:$0xff]  }
  0x99   :  { %1493 = vmatpush1.bf16.msra.mxu1 %v2914_v18  ;;  %1416 = vmatprep.subr.bf16.mxu0 %v2925_v22  ;;  %v2998_v18 = vld [vmem:[#allocation5 + $0x128] ss:$16 sps:$4 sm:$0xff]   ;;  %v3006_v22 = vld [vmem:[#allocation5 + $0x10c] ss:$16 sps:$4 sm:$0xff]  }
  0x9a   :  { %1494 = vmatprep.subr.bf16.mxu1 %v2922_v21  ;;  %1524 = vmatprep.mubr.bf16.mxu1 %v3457_v49  ;;  %v2956_v49 = vld [vmem:[#allocation5 + $0x8] ss:$16 sps:$4 sm:$0xff]  }
  0x9b   :  { %v3001_v21 = vld [vmem:[#allocation5 + $0x2e8] ss:$16 sps:$4 sm:$0xff]  }
  0x9c   :  { %1417 = vmatpush1.bf16.msra.mxu0 %v2923_v24  ;;  %v3004_v24 = vld [vmem:[#allocation5 + $0x108] ss:$16 sps:$4 sm:$0xff]  }
  0x9d   :  { %1495 = vmatpush1.bf16.msra.mxu1 %v2920_v23  ;;  %1418 = vmatprep.subr.bf16.mxu0 %v2931_v26  ;;  %v3009_v23 = vld [vmem:[#allocation5 + $0x2cc] ss:$16 sps:$4 sm:$0xff]  }
  0x9e   :  { %1496 = vmatprep.subr.bf16.mxu1 %v2928_v25  ;;  %v3007_v25 = vld [vmem:[#allocation5 + $0x2c8] ss:$16 sps:$4 sm:$0xff]   ;;  %v3012_v26 = vld [vmem:[#allocation5 + $0x4ec] ss:$16 sps:$4 sm:$0xff]  }
  0xa0   :  { %1419 = vmatpush1.bf16.msra.mxu0 %v2929_v28  ;;  %v3010_v28 = vld [vmem:[#allocation5 + $0x4e8] ss:$16 sps:$4 sm:$0xff]  }
  0xa1   :  { %1497 = vmatpush1.bf16.msra.mxu1 %v2926_v27  ;;  %1420 = vmatprep.subr.bf16.mxu0 %v2937_v30  ;;  %v3015_v27 = vld [vmem:[#allocation5 + $0x2ac] ss:$16 sps:$4 sm:$0xff]  }
  0xa2   :  { %1498 = vmatprep.subr.bf16.mxu1 %v2934_v29  ;;  %v3013_v29 = vld [vmem:[#allocation5 + $0x2a8] ss:$16 sps:$4 sm:$0xff]   ;;  %v3018_v30 = vld [vmem:[#allocation5 + $0x4cc] ss:$16 sps:$4 sm:$0xff]  }
  0xa4   :  { %1421 = vmatpush1.bf16.msra.mxu0 %v2935_v32  ;;  %v3016_v32 = vld [vmem:[#allocation5 + $0x4c8] ss:$16 sps:$4 sm:$0xff]  }
  0xa5   :  { %1499 = vmatpush1.bf16.msra.mxu1 %v2932_v31  ;;  %1422 = vmatprep.subr.bf16.mxu0 %v2943_v34  ;;  %v3021_v31 = vld [vmem:[#allocation5 + $0x28c] ss:$16 sps:$4 sm:$0xff]  }
  0xa6   :  { %1500 = vmatprep.subr.bf16.mxu1 %v2940_v33  ;;  %v3019_v33 = vld [vmem:[#allocation5 + $0x288] ss:$16 sps:$4 sm:$0xff]   ;;  %v3024_v34 = vld [vmem:[#allocation5 + $0x4ac] ss:$16 sps:$4 sm:$0xff]  }
  0xa8   :  { %1423 = vmatpush1.bf16.msra.mxu0 %v2941_v38  ;;  %v3030_v38 = vld [vmem:[#allocation5 + $0x48c] ss:$16 sps:$4 sm:$0xff]  }
  0xa9   :  { %1501 = vmatpush1.bf16.msra.mxu1 %v2938_v37  ;;  %1424 = vmatprep.subr.bf16.mxu0 %v2949_v40  ;;  %v3022_v37 = vld [vmem:[#allocation5 + $0x4a8] ss:$16 sps:$4 sm:$0xff]  }
  0xaa   :  { %1502 = vmatprep.subr.bf16.mxu1 %v2946_v39  ;;  %v3033_v39 = vld [vmem:[#allocation5 + $0x24c] ss:$16 sps:$4 sm:$0xff]   ;;  %v3028_v40 = vld [vmem:[#allocation5 + $0x488] ss:$16 sps:$4 sm:$0xff]  }
  0xac   :  { %1425 = vmatpush1.bf16.msra.mxu0 %v2947_v42  ;;  %v3039_v42 = vld [vmem:[#allocation5 + $0x22c] ss:$16 sps:$4 sm:$0xff]  }
  0xad   :  { %1503 = vmatpush1.bf16.msra.mxu1 %v2944_v41  ;;  %1426 = vmatprep.subr.bf16.mxu0 %v2955_v44  ;;  %v3036_v41 = vld [vmem:[#allocation5 + $0x46c] ss:$16 sps:$4 sm:$0xff]   ;;  %v3037_v44 = vld [vmem:[#allocation5 + $0x228] ss:$16 sps:$4 sm:$0xff]  }
  0xae   :  { %1504 = vmatprep.subr.bf16.mxu1 %v2952_v43  ;;  %v3034_v43 = vld [vmem:[#allocation5 + $0x468] ss:$16 sps:$4 sm:$0xff]  }
  0xb0   :  { %1427 = vmatpush2.bf16.msra.mxu0 %v2953_v46  ;;  %v3040_v46 = vld [vmem:[#allocation5 + $0x448] ss:$16 sps:$4 sm:$0xff]  }
  0xb1   :  { %1505 = vmatpush1.bf16.msra.mxu1 %v2950_v45  ;;  %1428 = vmatprep.subr.bf16.mxu0 %v2961_v48  ;;  %v3045_v45 = vld [vmem:[#allocation5 + $0x20c] ss:$16 sps:$4 sm:$0xff]  }
  0xb2   :  { %1506 = vmatprep.subr.bf16.mxu1 %v2958_v47  ;;  %v3043_v47 = vld [vmem:[#allocation5 + $0x208] ss:$16 sps:$4 sm:$0xff]   ;;  %v3048_v48 = vld [vmem:[#allocation5 + $0x42c] ss:$16 sps:$4 sm:$0xff]  }
  0xb4   :  { %1429 = vmatpush2.bf16.msra.mxu0 %v2959_v50  ;;  %v3046_v50 = vld [vmem:[#allocation5 + $0x428] ss:$16 sps:$4 sm:$0xff]  }
  0xb5   :  { %1507 = vmatpush1.bf16.msra.mxu1 %v2956_v49  ;;  %1430 = vmatprep.subr.bf16.mxu0 %v2967_v53  ;;  %v3051_v49 = vld [vmem:[#allocation5 + $0x3ec] ss:$16 sps:$4 sm:$0xff]  }
  0xb6   :  { %1508 = vmatprep.subr.bf16.mxu1 %v2964_v51  ;;  %v3049_v51 = vld [vmem:[#allocation5 + $0x3e8] ss:$16 sps:$4 sm:$0xff]   ;;  %v3054_v53 = vld [vmem:[#allocation5 + $0x40c] ss:$16 sps:$4 sm:$0xff]  }
  0xb8   :  { %1431 = vmatpush2.bf16.msra.mxu0 %v2965_v55  ;;  %v3052_v55 = vld [vmem:[#allocation5 + $0x408] ss:$16 sps:$4 sm:$0xff]  }
  0xb9   :  { %1509 = vmatpush2.bf16.msra.mxu1 %v2962_v54  ;;  %1432 = vmatprep.subr.bf16.mxu0 %v2973_v57  ;;  %v3057_v54 = vld [vmem:[#allocation5 + $0x3cc] ss:$16 sps:$4 sm:$0xff]  }
  0xba   :  { %1510 = vmatprep.subr.bf16.mxu1 %v2970_v56  ;;  %v3055_v56 = vld [vmem:[#allocation5 + $0x3c8] ss:$16 sps:$4 sm:$0xff]   ;;  %v3060_v57 = vld [vmem:[#allocation5 + $0x5ec] ss:$16 sps:$4 sm:$0xff]  }
  0xbc   :  { %1433 = vmatpush2.bf16.msra.mxu0 %v2971_v59  ;;  %v3058_v59 = vld [vmem:[#allocation5 + $0x5e8] ss:$16 sps:$4 sm:$0xff]  }
  0xbd   :  { %1511 = vmatpush2.bf16.msra.mxu1 %v2968_v58  ;;  %1434 = vmatprep.subr.bf16.mxu0 %v2979_v61  ;;  %v3063_v58 = vld [vmem:[#allocation5 + $0x3ac] ss:$16 sps:$4 sm:$0xff]  }
  0xbe   :  { %1512 = vmatprep.subr.bf16.mxu1 %v2976_v60  ;;  %v3061_v60 = vld [vmem:[#allocation5 + $0x3a8] ss:$16 sps:$4 sm:$0xff]   ;;  %v3066_v61 = vld [vmem:[#allocation5 + $0x5cc] ss:$16 sps:$4 sm:$0xff]  }
  0xc0   :  { %1435 = vmatpush2.bf16.msra.mxu0 %v2977_v63  ;;  %v3064_v63 = vld [vmem:[#allocation5 + $0x5c8] ss:$16 sps:$4 sm:$0xff]  }
  0xc1   :  { %1513 = vmatpush2.bf16.msra.mxu1 %v2974_v62  ;;  %1436 = vmatprep.subr.bf16.mxu0 %v2985_v1  ;;  %v3069_v62 = vld [vmem:[#allocation5 + $0x38c] ss:$16 sps:$4 sm:$0xff]  }
  0xc2   :  { %1514 = vmatprep.subr.bf16.mxu1 %v2982_v0  ;;  %v3067_v0 = vld [vmem:[#allocation5 + $0x388] ss:$16 sps:$4 sm:$0xff]   ;;  %v3072_v1 = vld [vmem:[#allocation5 + $0x5ac] ss:$16 sps:$4 sm:$0xff]  }
  0xc4   :  { %1437 = vmatpush2.bf16.msra.mxu0 %v2983_v3  ;;  %v3070_v3 = vld [vmem:[#allocation5 + $0x5a8] ss:$16 sps:$4 sm:$0xff]  }
  0xc5   :  { %1515 = vmatpush2.bf16.msra.mxu1 %v2980_v2  ;;  %1438 = vmatprep.subr.bf16.mxu0 %v2991_v5  ;;  %v3075_v2 = vld [vmem:[#allocation5 + $0x36c] ss:$16 sps:$4 sm:$0xff]  }
  0xc6   :  { %1516 = vmatprep.subr.bf16.mxu1 %v2988_v4  ;;  %v3073_v4 = vld [vmem:[#allocation5 + $0x368] ss:$16 sps:$4 sm:$0xff]   ;;  %v3078_v5 = vld [vmem:[#allocation5 + $0x58c] ss:$16 sps:$4 sm:$0xff]  }
  0xc8   :  { %1439 = vmatpush2.bf16.msra.mxu0 %v2989_v7  ;;  %v3076_v7 = vld [vmem:[#allocation5 + $0x588] ss:$16 sps:$4 sm:$0xff]  }
  0xc9   :  { %1517 = vmatpush2.bf16.msra.mxu1 %v2986_v6  ;;  %1440 = vmatprep.subr.bf16.mxu0 %v2997_v11  ;;  %v3081_v6 = vld [vmem:[#allocation5 + $0x34c] ss:$16 sps:$4 sm:$0xff]  }
  0xca   :  { %1518 = vmatprep.subr.bf16.mxu1 %v2994_v10  ;;  %v3079_v10 = vld [vmem:[#allocation5 + $0x348] ss:$16 sps:$4 sm:$0xff]   ;;  %v3084_v11 = vld [vmem:[#allocation5 + $0x56c] ss:$16 sps:$4 sm:$0xff]  }
  0xcc   :  { %1441 = vmatpush2.bf16.msra.mxu0 %v2995_v13  ;;  %v3082_v13 = vld [vmem:[#allocation5 + $0x568] ss:$16 sps:$4 sm:$0xff]  }
  0xcd   :  { %1519 = vmatpush2.bf16.msra.mxu1 %v2992_v12  ;;  %1533 = vmatprep.subr.bf16.mxu0 %v3003_v17  ;;  %v3087_v12 = vld [vmem:[#allocation5 + $0x32c] ss:$16 sps:$4 sm:$0xff]  }
  0xce   :  { %1520 = vmatprep.subr.bf16.mxu1 %v3000_v14  ;;  %v3085_v14 = vld [vmem:[#allocation5 + $0x328] ss:$16 sps:$4 sm:$0xff]   ;;  %v3093_v17 = vld [vmem:[#allocation5 + $0x30c] ss:$16 sps:$4 sm:$0xff]  }
  0xcf   :  { %1443 = vmatmul.mubr.bf16.vlgmr.msra.gmra.mxu0 %v3478_v20 }
  0xd0   :  { %1534 = vmatpush1.bf16.msra.mxu0 %v3001_v21  ;;  %1565 = vmatprep.mubr.bf16.mxu0 %v3459_v52  ;;  %v3025_v52 = vld [vmem:[#allocation5 + $0x268] ss:$16 sps:$4 sm:$0xff]  }
  0xd1   :  { %1521 = vmatpush2.bf16.msra.mxu1 %v2998_v18  ;;  %1535 = vmatprep.subr.bf16.mxu0 %v3009_v23  ;;  %v3088_v18 = vld [vmem:[#allocation5 + $0x548] ss:$16 sps:$4 sm:$0xff]   ;;  %v3099_v23 = vld [vmem:[#allocation5 + $0x60c] ss:$16 sps:$4 sm:$0xff]  }
  0xd2   :  { %1522 = vmatprep.subr.bf16.mxu1 %v3006_v22  ;;  %v3091_v21 = vld [vmem:[#allocation5 + $0x308] ss:$16 sps:$4 sm:$0xff]   ;;  %v3096_v22 = vld [vmem:[#allocation5 + $0x52c] ss:$16 sps:$4 sm:$0xff]  }
  0xd4   :  { %1536 = vmatpush1.bf16.msra.mxu0 %v3007_v25  ;;  %v3097_v25 = vld [vmem:[#allocation5 + $0x608] ss:$16 sps:$4 sm:$0xff]  }
  0xd5   :  { %1523 = vmatpush2.bf16.msra.mxu1 %v3004_v24  ;;  %1537 = vmatprep.subr.bf16.mxu0 %v3015_v27  ;;  %v3094_v24 = vld [vmem:[#allocation5 + $0x528] ss:$16 sps:$4 sm:$0xff]  }
  0xd6   :  { %1574 = vmatprep.subr.bf16.mxu1 %v3012_v26  ;;  %v3102_v26 = vld [vmem:[#allocation5 + $0x50c] ss:$16 sps:$4 sm:$0xff]   ;;  %v3105_v27 = vld [vmem:[#allocation8 + $0x74] ss:$8 sps:$4 sm:$0xff]  }
  0xd8   :  { %1525 = vmatmul.mubr.bf16.vlgmr.msra.gmra.mxu1 %v3463_v8  ;;  %1538 = vmatpush1.bf16.msra.mxu0 %v3013_v29  ;;  %v3031_v8 = vld [vmem:[#allocation5 + $0x248] ss:$16 sps:$4 sm:$0xff]   ;;  %v3103_v29 = vld [vmem:[#allocation8 + $0x70] ss:$8 sps:$4 sm:$0xff]  }
  0xd9   :  { %1575 = vmatpush1.bf16.msra.mxu1 %v3010_v28  ;;  %1539 = vmatprep.subr.bf16.mxu0 %v3021_v31  ;;  %v3100_v28 = vld [vmem:[#allocation5 + $0x508] ss:$16 sps:$4 sm:$0xff]   ;;  %v3106_v31 = vld [vmem:[#allocation8 + $0x60] ss:$8 sps:$4 sm:$0xff]  }
  0xda   :  { %1576 = vmatprep.subr.bf16.mxu1 %v3018_v30  ;;  %1606 = vmatprep.mubr.bf16.mxu1 %v3475_v36  ;;  %v3042_v36 = vld [vmem:[#allocation5 + $0x44c] ss:$16 sps:$4 sm:$0xff]   ;;  %v3108_v30 = vld [vmem:[#allocation8 + $0x64] ss:$8 sps:$4 sm:$0xff]  }
  0xdc   :  { %1540 = vmatpush1.bf16.msra.mxu0 %v3019_v33  ;;  %v3114_v33 = vld [vmem:[#allocation8 + $0x44] ss:$8 sps:$4 sm:$0xff]  }
  0xdd   :  { %1577 = vmatpush1.bf16.msra.mxu1 %v3016_v32  ;;  %1541 = vmatprep.subr.bf16.mxu0 %v3027_v35  ;;  %v3111_v32 = vld [vmem:[#allocation8 + $0x54] ss:$8 sps:$4 sm:$0xff]  }
  0xde   :  { %1578 = vmatprep.subr.bf16.mxu1 %v3024_v34  ;;  %v3151_v34 = vld [vmem:[#allocation8 + $0x170] ss:$8 sps:$4 sm:$0xff]   ;;  %v3153_v35 = vld [vmem:[#allocation8 + $0x174] ss:$8 sps:$4 sm:$0xff]  }
  0xe0   :  { %1542 = vmatpush1.bf16.msra.mxu0 %v3025_v52  ;;  %v3154_v52 = vld [vmem:[#allocation8 + $0x160] ss:$8 sps:$4 sm:$0xff]  }
  0xe1   :  { %1579 = vmatpush1.bf16.msra.mxu1 %v3022_v37  ;;  %1543 = vmatprep.subr.bf16.mxu0 %v3033_v39  ;;  %v3112_v37 = vld [vmem:[#allocation8 + $0x40] ss:$8 sps:$4 sm:$0xff]   ;;  %v3157_v39 = vld [vmem:[#allocation8 + $0x150] ss:$8 sps:$4 sm:$0xff]  }
  0xe2   :  { %1580 = vmatprep.subr.bf16.mxu1 %v3030_v38  ;;  %v3115_v38 = vld [vmem:[#allocation8 + $0x30] ss:$8 sps:$4 sm:$0xff]  }
  0xe4   :  { %1544 = vmatpush1.bf16.msra.mxu0 %v3031_v8  ;;  %v3162_v8 = vld [vmem:[#allocation8 + $0x144] ss:$8 sps:$4 sm:$0xff]  }
  0xe5   :  { %1581 = vmatpush1.bf16.msra.mxu1 %v3028_v40  ;;  %1545 = vmatprep.subr.bf16.mxu0 %v3039_v42  ;;  %v3120_v40 = vld [vmem:[#allocation8 + $0x24] ss:$8 sps:$4 sm:$0xff]   ;;  %v3160_v42 = vld [vmem:[#allocation8 + $0x140] ss:$8 sps:$4 sm:$0xff]  }
  0xe6   :  { %1582 = vmatprep.subr.bf16.mxu1 %v3036_v41  ;;  %v3118_v41 = vld [vmem:[#allocation8 + $0x20] ss:$8 sps:$4 sm:$0xff]  }
  0xe8   :  { %1546 = vmatpush1.bf16.msra.mxu0 %v3037_v44  ;;  %v3165_v44 = vld [vmem:[#allocation8 + $0x134] ss:$8 sps:$4 sm:$0xff]  }
  0xe9   :  { %1583 = vmatpush1.bf16.msra.mxu1 %v3034_v43  ;;  %1547 = vmatprep.subr.bf16.mxu0 %v3045_v45  ;;  %v3123_v43 = vld [vmem:[#allocation8 + $0x14] ss:$8 sps:$4 sm:$0xff]   ;;  %v3163_v45 = vld [vmem:[#allocation8 + $0x130] ss:$8 sps:$4 sm:$0xff]  }
  0xea   :  { %1584 = vmatprep.subr.bf16.mxu1 %v3042_v36  ;;  %v3121_v36 = vld [vmem:[#allocation8 + $0x10] ss:$8 sps:$4 sm:$0xff]  }
  0xec   :  { %1548 = vmatpush1.bf16.msra.mxu0 %v3043_v47  ;;  %v3168_v47 = vld [vmem:[#allocation8 + $0x124] ss:$8 sps:$4 sm:$0xff]  }
  0xed   :  { %1585 = vmatpush1.bf16.msra.mxu1 %v3040_v46  ;;  %1549 = vmatprep.subr.bf16.mxu0 %v3051_v49  ;;  %v3126_v46 = vld [vmem:[#allocation8 + $0x4] ss:$8 sps:$4 sm:$0xff]   ;;  %v3166_v49 = vld [vmem:[#allocation8 + $0x120] ss:$8 sps:$4 sm:$0xff]  }
  0xee   :  { %1586 = vmatprep.subr.bf16.mxu1 %v3048_v48  ;;  %v3124_v48 = vld [vmem:[#allocation8] ss:$8 sps:$4 sm:$0xff]  }
  0xf0   :  { %1550 = vmatpush2.bf16.msra.mxu0 %v3049_v51  ;;  %v3171_v51 = vld [vmem:[#allocation8 + $0x114] ss:$8 sps:$4 sm:$0xff]  }
  0xf1   :  { %1587 = vmatpush1.bf16.msra.mxu1 %v3046_v50  ;;  %1551 = vmatprep.subr.bf16.mxu0 %v3057_v54  ;;  %v3129_v50 = vld [vmem:[#allocation8 + $0xf4] ss:$8 sps:$4 sm:$0xff]   ;;  %v3169_v54 = vld [vmem:[#allocation8 + $0x110] ss:$8 sps:$4 sm:$0xff]  }
  0xf2   :  { %1588 = vmatprep.subr.bf16.mxu1 %v3054_v53  ;;  %v3127_v53 = vld [vmem:[#allocation8 + $0xf0] ss:$8 sps:$4 sm:$0xff]  }
  0xf4   :  { %1552 = vmatpush2.bf16.msra.mxu0 %v3055_v56  ;;  %v3174_v56 = vld [vmem:[#allocation8 + $0x104] ss:$8 sps:$4 sm:$0xff]  }
  0xf5   :  { %1589 = vmatpush1.bf16.msra.mxu1 %v3052_v55  ;;  %1553 = vmatprep.subr.bf16.mxu0 %v3063_v58  ;;  %v3132_v55 = vld [vmem:[#allocation8 + $0xe4] ss:$8 sps:$4 sm:$0xff]   ;;  %v3172_v58 = vld [vmem:[#allocation8 + $0x100] ss:$8 sps:$4 sm:$0xff]  }
  0xf6   :  { %1590 = vmatprep.subr.bf16.mxu1 %v3060_v57  ;;  %v3130_v57 = vld [vmem:[#allocation8 + $0xe0] ss:$8 sps:$4 sm:$0xff]  }
  0xf8   :  { %1554 = vmatpush2.bf16.msra.mxu0 %v3061_v60  ;;  %v3177_v60 = vld [vmem:[#allocation8 + $0x1f4] ss:$8 sps:$4 sm:$0xff]  }
  0xf9   :  { %1591 = vmatpush2.bf16.msra.mxu1 %v3058_v59  ;;  %1555 = vmatprep.subr.bf16.mxu0 %v3069_v62  ;;  %v3135_v59 = vld [vmem:[#allocation8 + $0xd4] ss:$8 sps:$4 sm:$0xff]   ;;  %v3175_v62 = vld [vmem:[#allocation8 + $0x1f0] ss:$8 sps:$4 sm:$0xff]  }
  0xfa   :  { %1592 = vmatprep.subr.bf16.mxu1 %v3066_v61  ;;  %v3133_v61 = vld [vmem:[#allocation8 + $0xd0] ss:$8 sps:$4 sm:$0xff]  }
  0xfc   :  { %1556 = vmatpush2.bf16.msra.mxu0 %v3067_v0  ;;  %v3180_v0 = vld [vmem:[#allocation8 + $0x1e4] ss:$8 sps:$4 sm:$0xff]  }
  0xfd   :  { %1593 = vmatpush2.bf16.msra.mxu1 %v3064_v63  ;;  %1557 = vmatprep.subr.bf16.mxu0 %v3075_v2  ;;  %v3138_v63 = vld [vmem:[#allocation8 + $0xc4] ss:$8 sps:$4 sm:$0xff]   ;;  %v3178_v2 = vld [vmem:[#allocation8 + $0x1e0] ss:$8 sps:$4 sm:$0xff]  }
  0xfe   :  { %1594 = vmatprep.subr.bf16.mxu1 %v3072_v1  ;;  %v3136_v1 = vld [vmem:[#allocation8 + $0xc0] ss:$8 sps:$4 sm:$0xff]  }
 0x100   :  { %1558 = vmatpush2.bf16.msra.mxu0 %v3073_v4  ;;  %v3183_v4 = vld [vmem:[#allocation8 + $0x1d4] ss:$8 sps:$4 sm:$0xff]  }
 0x101   :  { %1595 = vmatpush2.bf16.msra.mxu1 %v3070_v3  ;;  %1559 = vmatprep.subr.bf16.mxu0 %v3081_v6  ;;  %v3141_v3 = vld [vmem:[#allocation8 + $0xb4] ss:$8 sps:$4 sm:$0xff]   ;;  %v3181_v6 = vld [vmem:[#allocation8 + $0x1d0] ss:$8 sps:$4 sm:$0xff]  }
 0x102   :  { %1596 = vmatprep.subr.bf16.mxu1 %v3078_v5  ;;  %v3139_v5 = vld [vmem:[#allocation8 + $0xb0] ss:$8 sps:$4 sm:$0xff]  }
 0x104   :  { %1560 = vmatpush2.bf16.msra.mxu0 %v3079_v10  ;;  %v3186_v10 = vld [vmem:[#allocation8 + $0x1c4] ss:$8 sps:$4 sm:$0xff]  }
 0x105   :  { %1597 = vmatpush2.bf16.msra.mxu1 %v3076_v7  ;;  %1561 = vmatprep.subr.bf16.mxu0 %v3087_v12  ;;  %v3144_v7 = vld [vmem:[#allocation8 + $0xa4] ss:$8 sps:$4 sm:$0xff]   ;;  %v3184_v12 = vld [vmem:[#allocation8 + $0x1c0] ss:$8 sps:$4 sm:$0xff]  }
 0x106   :  { %1598 = vmatprep.subr.bf16.mxu1 %v3084_v11  ;;  %v3142_v11 = vld [vmem:[#allocation8 + $0xa0] ss:$8 sps:$4 sm:$0xff]  }
 0x108   :  { %1562 = vmatpush2.bf16.msra.mxu0 %v3085_v14  ;;  %v3145_v14 = vld [vmem:[#allocation8 + $0x90] ss:$8 sps:$4 sm:$0xff]  }
 0x109   :  { %1599 = vmatpush2.bf16.msra.mxu1 %v3082_v13  ;;  %1563 = vmatprep.subr.bf16.mxu0 %v3093_v17  ;;  %v3147_v13 = vld [vmem:[#allocation8 + $0x94] ss:$8 sps:$4 sm:$0xff]  }
 0x10a   :  { %1600 = vmatprep.subr.bf16.mxu1 %v3090_v15  ;;  %v3150_v15 = vld [vmem:[#allocation8 + $0x84] ss:$8 sps:$4 sm:$0xff]  }
 0x10c   :  { %1564 = vmatpush2.bf16.msra.mxu0 %v3091_v21  ;;  %v3148_v21 = vld [vmem:[#allocation8 + $0x80] ss:$8 sps:$4 sm:$0xff]  }
 0x10d   :  { %1601 = vmatpush2.bf16.msra.mxu1 %v3088_v18  ;;  %1629 = vmatprep.subr.bf16.mxu0 %v3099_v23 }
 0x10e   :  { %1602 = vmatprep.subr.bf16.mxu1 %v3096_v22 }
 0x10f   :  { %1566 = vmatmul.mubr.bf16.vlgmr.msra.gmra.mxu0 %v3465_v9  ;;  %v3109_v9 = vld [vmem:[#allocation8 + $0x50] ss:$8 sps:$4 sm:$0xff]  }
 0x110   :  { %1630 = vmatpush1.bf16.msra.mxu0 %v3097_v25  ;;  %1647 = vmatprep.mubr.bf16.mxu0 %v3385_v16  ;;  %v3156_v16 = vld [vmem:[#allocation8 + $0x164] ss:$8 sps:$4 sm:$0xff]   ;;  %v3187_v25 = vld [vmem:[#allocation8 + $0x1b0] ss:$8 sps:$4 sm:$0xff]  }
 0x111   :  { %1603 = vmatpush2.bf16.msra.mxu1 %v3094_v24  ;;  %2060 = vmatprep.subr.bf16.mxu0 %v3105_v27  ;;  %v3189_v24 = vld [vmem:[#allocation8 + $0x1b4] ss:$8 sps:$4 sm:$0xff]  }
 0x112   :  { %1604 = vmatprep.subr.bf16.mxu1 %v3102_v26 }
 0x115   :  { %1605 = vmatpush2.bf16.msra.mxu1 %v3100_v28 }
 0x116   :  { %2101 = vmatprep.subr.bf16.mxu1 %v3153_v35 }
 0x117   :  { %2651 = vmatmul.mubr.msk.bf16.vlgmr.msra.gmra.mxu0 %vm1324_vm0, %v3470_v19  ;;  %v3159_v19 = vld [vmem:[#allocation8 + $0x154] ss:$8 sps:$4 sm:$0xff]  }
 0x118   :  { %1607 = vmatmul.mubr.bf16.vlgmr.msra.gmra.mxu1 %v3478_v20  ;;  %2061 = vmatpush1.bf16.msra.mxu0 %v3103_v29  ;;  %v3117_v20 = vld [vmem:[#allocation8 + $0x34] ss:$8 sps:$4 sm:$0xff]  }
 0x119   :  { %2062 = vmatprep.subr.bf16.mxu0 %v3108_v30  ;;  %2102 = vmatpush1.bf16.msra.mxu1 %v3151_v34  ;;  %v3192_v30 = vld [vmem:[#allocation8 + $0x1a4] ss:$8 sps:$4 sm:$0xff]   ;;  %v3193_v34 = vld [vmem:[#allocation8 + $0x190] ss:$8 sps:$4 sm:$0xff]  }
 0x11a   :  { %2103 = vmatprep.subr.bf16.mxu1 %v3156_v16 }
 0x11c   :  { %2063 = vmatpush1.bf16.msra.mxu0 %v3106_v31  ;;  %v3190_v31 = vld [vmem:[#allocation8 + $0x1a0] ss:$8 sps:$4 sm:$0xff]  }
 0x11d   :  { %2064 = vmatprep.subr.bf16.mxu0 %v3111_v32  ;;  %2104 = vmatpush1.bf16.msra.mxu1 %v3154_v52  ;;  %v3196_v52 = vld [vmem:[#allocation8 + $0x180] ss:$8 sps:$4 sm:$0xff]  }
 0x11e   :  { %2105 = vmatprep.subr.bf16.mxu1 %v3159_v19 }
 0x120   :  { %2065 = vmatpush1.bf16.msra.mxu0 %v3109_v9 }
 0x121   :  { %2066 = vmatprep.subr.bf16.mxu0 %v3114_v33  ;;  %2106 = vmatpush1.bf16.msra.mxu1 %v3157_v39  ;;  %v3195_v33 = vld [vmem:[#allocation8 + $0x194] ss:$8 sps:$4 sm:$0xff]  }
 0x122   :  { %2107 = vmatprep.subr.bf16.mxu1 %v3162_v8  ;;  %v322_v39 = vld [vmem:[#allocation7] sm:$0xf] }
 0x124   :  { %2067 = vmatpush1.bf16.msra.mxu0 %v3112_v37  ;;  %v3198_v37 = vld [vmem:[#allocation8 + $0x184] ss:$8 sps:$4 sm:$0xff]  }
 0x125   :  { %2068 = vmatprep.subr.bf16.mxu0 %v3117_v20  ;;  %2108 = vmatpush1.bf16.msra.mxu1 %v3160_v42  ;;  %v324_v20 = vlaneseq }
 0x126   :  { %2109 = vmatprep.subr.bf16.mxu1 %v3165_v44 }
 0x127   :  { %v3489_v19 = vshrl.u32 %v324_v20, 7  ;;  %v3208_v20 = vld [vmem:[#allocation10 + $0x18] sm:$0xff]  }
 0x128   :  { %2069 = vmatpush1.bf16.msra.mxu0 %v3115_v38 }
 0x129   :  { %2070 = vmatprep.subr.bf16.mxu0 %v3120_v40  ;;  %2110 = vmatpush1.bf16.msra.mxu1 %v3163_v45  ;;  %v326_v38 = vsub.s32 0, %v3489_v19  ;;  %v330_v40 = vsub.s32 1, %v3489_v19 }
 0x12a   :  { %2111 = vmatprep.subr.bf16.mxu1 %v3168_v47 }
 0x12b   :  { %v327_v8 = vrot.slane %v322_v39, %v326_v38 }
 0x12c   :  { %2071 = vmatpush1.bf16.msra.mxu0 %v3118_v41  ;;  %v331_v41 = vrot.slane %v322_v39, %v330_v40 }
 0x12d   :  { %2072 = vmatprep.subr.bf16.mxu0 %v3123_v43  ;;  %2112 = vmatpush1.bf16.msra.mxu1 %v3166_v49 }
 0x12e   :  { %2113 = vmatprep.subr.bf16.mxu1 %v3171_v51 }
 0x130   :  { %2073 = vmatpush1.bf16.msra.mxu0 %v3121_v36 }
 0x131   :  { %2074 = vmatprep.subr.bf16.mxu0 %v3126_v46  ;;  %2114 = vmatpush1.bf16.msra.mxu1 %v3169_v54 }
 0x132   :  { %2115 = vmatprep.subr.bf16.mxu1 %v3174_v56 }
 0x134   :  { %2075 = vmatpush1.bf16.msra.mxu0 %v3124_v48 }
 0x135   :  { %2076 = vmatprep.subr.bf16.mxu0 %v3129_v50  ;;  %2116 = vmatpush1.bf16.msra.mxu1 %v3172_v58 }
 0x136   :  { %2117 = vmatprep.subr.bf16.mxu1 %v3177_v60 }
 0x138   :  { %2077 = vmatpush2.bf16.msra.mxu0 %v3127_v53 }
 0x139   :  { %2078 = vmatprep.subr.bf16.mxu0 %v3132_v55  ;;  %2118 = vmatpush2.bf16.msra.mxu1 %v3175_v62  ;;  %v334_v62 = vsub.s32 2, %v3489_v19 }
 0x13a   :  { %2119 = vmatprep.subr.bf16.mxu1 %v3180_v0 }
 0x13c   :  { %2079 = vmatpush2.bf16.msra.mxu0 %v3130_v57 }
 0x13d   :  { %2080 = vmatprep.subr.bf16.mxu0 %v3135_v59  ;;  %2120 = vmatpush2.bf16.msra.mxu1 %v3178_v2 }
 0x13e   :  { %2121 = vmatprep.subr.bf16.mxu1 %v3183_v4 }
 0x140   :  { %2081 = vmatpush2.bf16.msra.mxu0 %v3133_v61 }
 0x141   :  { %2082 = vmatprep.subr.bf16.mxu0 %v3138_v63  ;;  %2122 = vmatpush2.bf16.msra.mxu1 %v3181_v6  ;;  %v338_v63 = vsub.s32 3, %v3489_v19  ;;  %v3222_v19 = vld [vmem:[#allocation11] sm:$0xff]  }
 0x142   :  { %2123 = vmatprep.subr.bf16.mxu1 %v3186_v10 }
 0x144   :  { %2083 = vmatpush2.bf16.msra.mxu0 %v3136_v1  ;;  %v335_v1 = vrot.slane %v322_v39, %v334_v62 }
 0x145   :  { %2084 = vmatprep.subr.bf16.mxu0 %v3141_v3  ;;  %2124 = vmatpush2.bf16.msra.mxu1 %v3184_v12  ;;  %v339_v3 = vrot.slane %v322_v39, %v338_v63  ;;  %v3209_v39 = vld [vmem:[#allocation10 + $0x50] sm:$0xff]  }
 0x146   :  { %2125 = vmatprep.subr.bf16.mxu1 %v3189_v24 }
 0x148   :  { %2085 = vmatpush2.bf16.msra.mxu0 %v3139_v5 }
 0x149   :  { %2086 = vmatprep.subr.bf16.mxu0 %v3144_v7  ;;  %2126 = vmatpush2.bf16.msra.mxu1 %v3187_v25 }
 0x14a   :  { %2127 = vmatprep.subr.bf16.mxu1 %v3192_v30 }
 0x14c   :  { %2087 = vmatpush2.bf16.msra.mxu0 %v3142_v11 }
 0x14d   :  { %2088 = vmatprep.subr.bf16.mxu0 %v3147_v13  ;;  %2128 = vmatpush2.bf16.msra.mxu1 %v3190_v31  ;;  %v3199_v31 = vld [vmem:[#allocation10 + $0x78] sm:$0xff]  }
 0x14e   :  { %2129 = vmatprep.subr.bf16.mxu1 %v3195_v33  ;;  %v3202_v33 = vld [vmem:[#allocation10 + $0x30] sm:$0xff]  }
 0x14f   :  { %v1362_v17 = vpop.f32.mrf.mxu0 }
 0x150   :  { %v1403_v18 = vpop.f32.mrf.mxu1  ;;  %2089 = vmatpush2.bf16.msra.mxu0 %v3145_v14  ;;  %v1363_v42 = vadd.f32 %v1362_v17, %v327_v8  ;;  %v3210_v8 = vld [vmem:[#allocation10 + $0x10] sm:$0xff]  }
 0x151   :  { %v1364_v22 = vpop.f32.mrf.mxu0  ;;  %2090 = vmatprep.subr.bf16.mxu0 %v3150_v15  ;;  %2130 = vmatpush2.bf16.msra.mxu1 %v3193_v34  ;;  %v3203_v34 = vld [vmem:[#allocation10 + $0x68] sm:$0xff]  }
 0x152   :  { %v1405_v23 = vpop.f32.mrf.mxu1  ;;  %2131 = vmatprep.subr.bf16.mxu1 %v3198_v37  ;;  %v1365_v43 = vadd.f32 %v1364_v22, %v331_v41  ;;  %v1404_v44 = vadd.f32 %v1403_v18, %v1363_v42  ;;  %v3206_v37 = vld [vmem:[#allocation10 + $0x20] sm:$0xff]   ;;  %v3211_v41 = vld [vmem:[#allocation10 + $0x48] sm:$0xff]  }
 0x153   :  { %v1366_v26 = vpop.f32.mrf.mxu0  ;;  %v3212_v42 = vld [vmem:[#allocation10 + $0x8] sm:$0xff]  }
 0x154   :  { %v1407_v27 = vpop.f32.mrf.mxu1  ;;  %2091 = vmatpush2.bf16.msra.mxu0 %v3148_v21  ;;  %v1406_v45 = vadd.f32 %v1405_v23, %v1365_v43  ;;  %v3213_v43 = vld [vmem:[#allocation10 + $0x40] sm:$0xff]  }
 0x155   :  { %v1367_v28 = vpop.f32.mrf.mxu0  ;;  %2132 = vmatpush2.bf16.msra.mxu1 %v3196_v52  ;;  %2742 = vmatprep.subr.bf16.mxu0 %v3199_v31  ;;  %v3207_v52 = vld [vmem:[#allocation10 + $0x58] sm:$0xff]  }
 0x156   :  { %v1408_v29 = vpop.f32.mrf.mxu1 }
 0x158   :  { %v1485_v32 = vpop.f32.mrf.mxu1 }
 0x15a   :  { %v1487_v9 = vpop.f32.mrf.mxu1 }
 0x15c   :  { %v1489_v35 = vpop.f32.mrf.mxu1 }
 0x15d   :  { %v3204_v35 = vld [vmem:[#allocation10 + $0x28] sm:$0xff]  }
 0x15e   :  { %v1490_v16 = vpop.f32.mrf.mxu1 }
 0x15f   :  { %v3205_v16 = vld [vmem:[#allocation10 + $0x60] sm:$0xff]  }
 0x18f   :  { %v1444_v36 = vpop.f32.mrf.mxu0 }
 0x190   :  { %v1445_v46 = vadd.f32 %v1444_v36, %v1404_v44  ;;  %v3214_v44 = vld [vmem:[#allocation10] sm:$0xff]   ;;  %v3215_v36 = vld [vmem:[#allocation11 + $0x38] sm:$0xff]  }
 0x191   :  { %v1446_v47 = vpop.f32.mrf.mxu0 }
 0x192   :  { %v1486_v48 = vadd.f32 %v1485_v32, %v1445_v46  ;;  %v1447_v49 = vadd.f32 %v1446_v47, %v1406_v45  ;;  %v3200_v32 = vld [vmem:[#allocation10 + $0x38] sm:$0xff]   ;;  %v3386_v45 = vmov 0.0   ;;  %v3216_v46 = vld [vmem:[#allocation11 + $0x30] sm:$0xff]   ;;  %v3217_v47 = vld [vmem:[#allocation11 + $0x28] sm:$0xff]  }
 0x193   :  { %v1448_v50 = vpop.f32.mrf.mxu0  ;;  %2773 = vmatprep.subr.bf16.mxu1 %v3386_v45 }
 0x194   :  { %v1488_v51 = vadd.f32 %v1487_v9, %v1447_v49  ;;  %v1656_v53 = vmax.f32 %v1486_v48, 0.0  ;;  %v3201_v9 = vld [vmem:[#allocation10 + $0x70] sm:$0xff]   ;;  %v3218_v48 = vld [vmem:[#allocation11 + $0x20] sm:$0xff]   ;;  %v3219_v49 = vld [vmem:[#allocation11 + $0x18] sm:$0xff]  }
 0x195   :  { %v1449_v54 = vpop.f32.mrf.mxu0 }
 0x196   :  { %v1657_v55 = vmax.f32 %v1488_v51, 0.0  ;;  %v1660_v58 = vpack.c.bf16 %v1656_v53, %v1656_v53 }
 0x198   :  { %v1526_v56 = vpop.f32.mrf.mxu1  ;;  %v1661_v57 = vpack.c.bf16 %v1657_v55, %v1657_v55  ;;  %v1728_v55 = vld [vmem:[%s3519_s4] sm:$0x3] }
 0x199   :  { %v1527_v5 = vadd.f32 %v1526_v56, %v335_v1  ;;  %v1733_v56 = vrot.slane %v1728_v55, %v326_v38  ;;  %v3221_v38 = vld [vmem:[#allocation11 + $0x8] sm:$0xff]  }
 0x19a   :  { %v1528_v59 = vpop.f32.mrf.mxu1  ;;  %2092 = vmatprep.mubr.bf16.mxu0 %v1661_v57  ;;  %v1737_v57 = vrot.slane %v1728_v55, %v330_v40 }
 0x19b   :  { %2093 = vmatmul.mubr.bf16.vlgmr.msra.gmra.mxu0 %v1660_v58  ;;  %v1529_v7 = vadd.f32 %v1528_v59, %v339_v3 }
 0x19c   :  { %v1530_v60 = vpop.f32.mrf.mxu1  ;;  %2743 = vmatpush3.bf16.msra.mxu0 %v3200_v32 }
 0x19d   :  { %2744 = vmatprep.subr.bf16.mxu0 %v3201_v9 }
 0x19e   :  { %v1531_v61 = vpop.f32.mrf.mxu1 }
 0x1a0   :  { %2745 = vmatpush3.bf16.msra.mxu0 %v3202_v33 }
 0x1a1   :  { %2746 = vmatprep.subr.bf16.mxu0 %v3203_v34 }
 0x1a4   :  { %2747 = vmatpush3.bf16.msra.mxu0 %v3204_v35 }
 0x1a5   :  { %2748 = vmatprep.subr.bf16.mxu0 %v3205_v16 }
 0x1a8   :  { %2749 = vmatpush3.bf16.msra.mxu0 %v3206_v37 }
 0x1a9   :  { %2750 = vmatprep.subr.bf16.mxu0 %v3207_v52 }
 0x1ac   :  { %2751 = vmatpush3.bf16.msra.mxu0 %v3208_v20 }
 0x1ad   :  { %2752 = vmatprep.subr.bf16.mxu0 %v3209_v39 }
 0x1b0   :  { %2753 = vmatpush3.bf16.msra.mxu0 %v3210_v8 }
 0x1b1   :  { %2754 = vmatprep.subr.bf16.mxu0 %v3211_v41 }
 0x1b4   :  { %2755 = vmatpush3.bf16.msra.mxu0 %v3212_v42 }
 0x1b5   :  { %2756 = vmatprep.subr.bf16.mxu0 %v3213_v43 }
 0x1b8   :  { %2757 = vmatpush3.bf16.msra.mxu0 %v3214_v44 }
 0x1cf   :  { %v1567_v0 = vpop.f32.mrf.mxu0 }
 0x1d0   :  { %v1568_v10 = vadd.f32 %v1567_v0, %v1527_v5 }
 0x1d1   :  { %v1569_v2 = vpop.f32.mrf.mxu0 }
 0x1d2   :  { %v1570_v13 = vadd.f32 %v1569_v2, %v1529_v7  ;;  %v2716_v7 = vld [vmem:[%s3521_s6] ss:$0 sm:$0xff]  ;;  %s3343_s6 = scalar_lea.vmem %s2443_s24, 64 }
 0x1d3   :  { %v1571_v4 = vpop.f32.mrf.mxu0  ;;  %p3344_p2 = scmp.ne.s32.totalorder %s2443_s24, %s3343_s6  ;;  %p3349_p4 = scmp.lt.s32.totalorder %s3343_s6, %s3343_s6 }
 0x1d5   :  { %v1572_v6 = vpop.f32.mrf.mxu0  ;;  %p3350_p5 = por %p3349_p4, %p3348_p3 }
 0x1d6   :  { %v3220_v6 = vld [vmem:[#allocation11 + $0x10] sm:$0xff]  }
 0x1d7   :  { %v1649_v12 = vpop.f32.mrf.mxu0  ;;  %p3351_p6 = pnand %p3350_p5, %p3344_p2 }
 0x1d8   :  { %v1608_v11 = vpop.f32.mrf.mxu1 }
 0x1d9   :  { %v1609_v14 = vadd.f32 %v1608_v11, %v1568_v10  ;;  %v1651_v17 = vpop.f32.mrf.mxu0 }
 0x1da   :  { %v1610_v15 = vpop.f32.mrf.mxu1 }
 0x1db   :  { %v1650_v18 = vadd.f32 %v1649_v12, %v1609_v14  ;;  %v1611_v21 = vadd.f32 %v1610_v15, %v1570_v13  ;;  %v1653_v23 = vpop.f32.mrf.mxu0 }
 0x1dc   :  { %v1612_v22 = vpop.f32.mrf.mxu1 }
 0x1dd   :  { %v1652_v24 = vadd.f32 %v1651_v17, %v1611_v21  ;;  %v1658_v25 = vmax.f32 %v1650_v18, 0.0  ;;  %v1654_v27 = vpop.f32.mrf.mxu0  ;;  %v2733_v18 = vld [vmem:[%s3523_s8] ss:$0 sm:$0xff] }
 0x1de   :  { %v1613_v26 = vpop.f32.mrf.mxu1 }
 0x1df   :  { %v1659_v28 = vmax.f32 %v1652_v24, 0.0  ;;  %v1662_v30 = vpack.c.bf16 %v1658_v25, %v1658_v25 }
 0x1e1   :  { %v1663_v29 = vpack.c.bf16 %v1659_v28, %v1659_v28 }
 0x1e3   :  { %2133 = vmatprep.mubr.bf16.mxu1 %v1663_v29 }
 0x1e4   :  { %2134 = vmatmul.mubr.bf16.vlgmr.msra.gmra.mxu1 %v1662_v30 }
 0x1e5   :  { %2774 = vmatpush3.bf16.msra.mxu1 %v3215_v36  ;;  %2789 = vmatprep.mubr.msk.bf16.mxu1 %vm3387_vm1, %v3386_v45 }
 0x1e6   :  { %2775 = vmatprep.subr.bf16.mxu1 %v3386_v45 }
 0x1e9   :  { %2776 = vmatpush3.bf16.msra.mxu1 %v3216_v46 }
 0x1ea   :  { %2777 = vmatprep.subr.bf16.mxu1 %v3386_v45 }
 0x1ed   :  { %2778 = vmatpush3.bf16.msra.mxu1 %v3217_v47 }
 0x1ee   :  { %2779 = vmatprep.subr.bf16.mxu1 %v3386_v45 }
 0x1f1   :  { %2780 = vmatpush3.bf16.msra.mxu1 %v3218_v48 }
 0x1f2   :  { %2781 = vmatprep.subr.bf16.mxu1 %v3386_v45 }
 0x1f5   :  { %2782 = vmatpush3.bf16.msra.mxu1 %v3219_v49 }
 0x1f6   :  { %2783 = vmatprep.subr.bf16.mxu1 %v3386_v45 }
 0x1f9   :  { %2784 = vmatpush3.bf16.msra.mxu1 %v3220_v6 }
 0x1fa   :  { %2785 = vmatprep.subr.bf16.mxu1 %v3386_v45 }
 0x1fd   :  { %2786 = vmatpush3.bf16.msra.mxu1 %v3221_v38 }
 0x1fe   :  { %2787 = vmatprep.subr.bf16.mxu1 %v3386_v45 }
 0x201   :  { %2788 = vmatpush3.bf16.msra.mxu1 %v3222_v19 }
 0x25b   :  { %v2094_v50 = vpop.f32.mrf.mxu0 }
 0x25c   :  { %v2095_v58 = vadd.f32 %v2094_v50, %v1733_v56 }
 0x25d   :  { %v2096_v51 = vpop.f32.mrf.mxu0 }
 0x25e   :  { %v2097_v60 = vadd.f32 %v2096_v51, %v1737_v57 }
 0x25f   :  { %v2098_v53 = vpop.f32.mrf.mxu0 }
 0x261   :  { %v2099_v54 = vpop.f32.mrf.mxu0 }
 0x2a4   :  { %v2135_v59 = vpop.f32.mrf.mxu1 }
 0x2a5   :  { %v2136_v61 = vadd.f32 %v2135_v59, %v2095_v58 }
 0x2a6   :  { %v2137_v62 = vpop.f32.mrf.mxu1 }
 0x2a7   :  { %v2138_v63 = vadd.f32 %v2137_v62, %v2097_v60  ;;  %v2142_v0 = vmax.f32 %v2136_v61, 0.0 }
 0x2a8   :  { %v2139_v1 = vpop.f32.mrf.mxu1 }
 0x2a9   :  { %v2143_v2 = vmax.f32 %v2138_v63, 0.0  ;;  %v2144_v5 = vpack.c.bf16 %v2142_v0, %v2142_v0 }
 0x2aa   :  { %v2140_v3 = vpop.f32.mrf.mxu1 }
 0x2ab   :  { %v2145_v4 = vpack.c.bf16 %v2143_v2, %v2143_v2 }
 0x2ad   :  { %2313 = vmatprep.mubr.bf16.mxu0 %v2145_v4 }
 0x2ae   :  { %2314 = vmatmul.mubr.bf16.vlgmr.msra.gmra.mxu0 %v2144_v5 }
 0x36e   :  { %v2758_v40 = vpop.f32.mrf.mxu0 }
 0x370   :  { %v2759_v10 = vpop.f32.mrf.mxu0 }
 0x371   :  { %v2760_v11 = vadd.f32 %v2759_v10, %v2758_v40 }
 0x372   :  { %v2761_v12 = vpop.f32.mrf.mxu0 }
 0x373   :  { %v2316_v13 = vadd.f32 %v2760_v11, %v2716_v7 }
 0x374   :  { %v2762_v14 = vpop.f32.mrf.mxu0 }
 0x375   :  { %v2321_v15 = vmax.f32 %v2316_v13, 0.0 }
 0x377   :  { %v2322_v17 = vpack.c.bf16 %v2321_v15, %v2321_v15 }
 0x379   :  { %2790 = vmatmul.mubr.bf16.vlgmr.msra.gmra.mxu1 %v2322_v17 }
 0x439   :  { %v2428_v21 = vpop.f32.mrf.mxu1 }
 0x43a   :  { %v2429_v22 = vadd.f32 %v2733_v18, %v2428_v21 }
 0x43b   :  { %v2791_v23 = vpop.f32.mrf.mxu1 }
 0x43c   :  { %v2434_v24 = vpack.c.bf16 %v2429_v22, %v2429_v22 }
 0x43d   :  { %v2431_v25 = vpop.f32.mrf.mxu1 }
 0x43e   :  { %2435 = vst [vmem:[#allocation13] sm:$0xf] %v2434_v24 }
 0x43f   :  { %v2792_v26 = vpop.f32.mrf.mxu1 }
 0x440   :  { %3354 = shalt.err (!%p3351_p6)
}
 0x441   :  { %2445 = dma.vmem_to_hbm [thread:$0]  %s2443_s24, 64, %s3524_s9, [#allocation4]  }
 0x442   :  { %3371 = dma.done.wait [#allocation4], 64  }
 0x443   :  { %3372 = vsyncadd [#allocation4], 4294967232 }
 0x444   :  { %2449 = vsyncpa [#allocation3], 1 }
 0x445   :  { %2450 = vsyncpa [#allocation6], 1 }
 0x446   :  { %2451 = vsyncpa [#allocation9], 1 }
 0x447   :  { %2452 = vsyncpa [#allocation12], 1 }
 0x448   :  { %2453 = vsyncpa [#allocation4], 1 }

</bundles_post_ra>
